<compile_context>
chip_gen: v5e
topology: v5e:2x2
jax: 0.10.0
libtpu: 0.0.40
codegen_flags: <defaults>
</compile_context>

<pallas_src>
import numpy as np
import jax
import jax.numpy as jnp
from jax.experimental import pallas as pl
from jax.experimental.pallas import tpu as pltpu


TB = 8          # batch tile (multiple of 8 sublanes)
LANE = 128      # lane padding granularity


# ----------------------------------------------------------------------------
# One-time, batch-size-independent parameter packing (host side)
# ----------------------------------------------------------------------------
def _pack_sel(H_in, H_out, stride, pad, order):
    """kh-stacked 0/1 row-selection matrix: (3*TB*H_out, TB*H_in).
    Tap kh block maps output row (b*H_out+oh | oh*TB+b) to input row b*H_in + h,
    h = stride*oh + kh - pad (rows left zero when h is in the zero padding)."""
    R = TB * H_out
    sh = np.zeros((3 * R, TB * H_in), np.float32)
    for kh in range(3):
        for b in range(TB):
            for oh in range(H_out):
                h = stride * oh + kh - pad
                if 0 <= h < H_in:
                    r = (b * H_out + oh) if order == "bh" else (oh * TB + b)
                    sh[kh * R + r, b * H_in + h] = 1.0
    return sh


def _pack_wgt(w_oihw, W_in, W_out, stride, pad):
    """kh-stacked, lane-padded weight matrix: (3*LANE, LANE).
    Row kh*LANE + wc*Cin + ci, col ow*Cout + co = W[co, ci, kh, kw] with
    wc = stride*ow + kw - pad (W zero-padding folded as zero rows)."""
    w = np.asarray(w_oihw, np.float32)
    Cout, Cin, KH, KW = w.shape
    m = np.zeros((KH * LANE, LANE), np.float32)
    for kh in range(KH):
        for kw in range(KW):
            for ow in range(W_out):
                wc = stride * ow + kw - pad
                if 0 <= wc < W_in:
                    m[kh * LANE + wc * Cin: kh * LANE + (wc + 1) * Cin,
                      ow * Cout: (ow + 1) * Cout] += w[:, :, kh, kw].T
    return m


def _pack_row(vec, W_out):
    """Per-channel vector tiled over output width, zero-padded to one 128-lane row."""
    vec = np.asarray(vec, np.float32)
    row = np.zeros((1, LANE), np.float32)
    row[0, :W_out * vec.shape[0]] = np.tile(vec, W_out)
    return row


def pack_params(params, *, bn_eps=1e-5):
    """Fold biases / BatchNorm / prior_fc and pre-build all selection & weight matrices.
    Batch-size independent (only the fixed batch tile TB=8 is baked in)."""
    p = {k: np.asarray(v, np.float32) for k, v in params.items()}
    bf, fp = {}, {}

    # conv1: Conv2d(1,8,3,s=2,p=1) + bias + ReLU                (Dropout = identity)
    bf["sh1"] = _pack_sel(28, 14, 2, 1, "bh")
    bf["m1"] = _pack_wgt(p["w1"], 28, 14, 2, 1)
    fp["t1"] = _pack_row(p["b1"], 14)

    # conv2: Conv2d(8,16,3,s=2,p=1) + bias + BatchNorm2d(16, eval) + ReLU
    g = p["bn_gamma"] / np.sqrt(p["bn_var"] + bn_eps)
    bf["sh2"] = _pack_sel(14, 7, 2, 1, "bh")
    bf["m2"] = _pack_wgt(p["w2"], 14, 7, 2, 1)
    fp["s2"] = _pack_row(g, 7)
    fp["t2"] = _pack_row((p["b2"] - p["bn_mean"]) * g + p["bn_beta"], 7)

    # conv3: Conv2d(16,32,3,s=2,p=0) + bias + ReLU.  Rows ordered oh*TB + b so the
    # head can lane-concat the three per-oh row blocks into one (TB, 384) slab.
    bf["sh3"] = _pack_sel(7, 3, 2, 0, "hb")
    bf["m3"] = _pack_wgt(p["w3"], 7, 3, 2, 0)
    fp["t3"] = _pack_row(p["b3"], 3)

    # Head.  wl1 rows = [prior_fc(8) ; flatten(288)], PyTorch NCHW flatten order
    # f = c*9 + oh*3 + ow.  Fold prior_fc into lin1 (exact composition) and permute
    # the flat part to the conv3 layout (row b, lane oh*128 + ow*32 + c), lane-padded.
    wl1 = p["wl1"]                                        # (296, 32)
    nout = wl1.shape[1]
    fp["wpa"] = p["wp"] @ wl1[:8]                         # (esd, 32)
    fp["b1c"] = (p["bp"] @ wl1[:8] + p["bl1"])[None, :]   # (1, 32)
    wf = wl1[8:].reshape(32, 3, 3, nout)                  # (c, oh, ow, out)
    w1b = np.zeros((3 * LANE, nout), np.float32)
    for oh in range(3):
        w1b[oh * LANE: oh * LANE + 96] = np.transpose(wf[:, oh], (1, 0, 2)).reshape(96, nout)
    bf["w1b"] = w1b
    bf["w2"] = p["wl2"]                                   # (32, esd)
    fp["b2"] = p["bl2"][None, :]

    packed = {k: jnp.asarray(v, jnp.bfloat16) for k, v in bf.items()}
    packed.update({k: jnp.asarray(v, jnp.float32) for k, v in fp.items()})
    return packed


# ----------------------------------------------------------------------------
# The fused Pallas kernel (one grid step = one tile of TB images)
# ----------------------------------------------------------------------------
def _encoder_kernel(x_ref, prior_ref,
                    sh1_ref, m1_ref, t1_ref,
                    sh2_ref, m2_ref, s2_ref, t2_ref,
                    sh3_ref, m3_ref, t3_ref,
                    wpa_ref, w1b_ref, b1c_ref, w2_ref, b2_ref,
                    o_ref):
    f32, bf16 = jnp.float32, jnp.bfloat16

    def lane_cat3(v):
        # (3*n, 128) -> (n, 3*128): 8-row-aligned slices + 128-aligned lane concat
        # (pure vreg re-tiling, no cross-lane shuffles).
        n = v.shape[0] // 3
        return jnp.concatenate([v[:n], v[n:2 * n], v[2 * n:]], axis=1)

    def conv(a_bf, sh_ref, m_ref, t_ref, s_ref=None):
        # (1) kh-fused 0/1 row-selection dot (exact gather; folds H zero-padding).
        v = jnp.dot(sh_ref[...], a_bf, preferred_element_type=f32)      # (3n, 128)
        # (2) single wide-K weight dot: K = 3*128 (folds kw taps + W zero-padding).
        u = lane_cat3(v).astype(bf16)                                   # (n, 384)
        acc = jnp.dot(u, m_ref[...], preferred_element_type=f32)        # (n, 128)
        if s_ref is not None:                                           # BN scale
            acc = acc * s_ref[...]
        return jnp.maximum(acc + t_ref[...], 0.0)                       # f32 epilogue

    a1 = conv(x_ref[...], sh1_ref, m1_ref, t1_ref)                   # (TB*14, 128)
    a2 = conv(a1.astype(bf16), sh2_ref, m2_ref, t2_ref, s2_ref)      # (TB*7,  128)
    a3 = conv(a2.astype(bf16), sh3_ref, m3_ref, t3_ref)              # (3*TB,  128)

    # Head: prior_fc folded into lin1; flat part contracts against the pre-permuted,
    # lane-padded (384, 32) matrix in a single dot.
    flat = lane_cat3(a3).astype(bf16)                                 # (TB, 384)
    h = (jnp.dot(prior_ref[...], wpa_ref[...], preferred_element_type=f32)
         + jnp.dot(flat, w1b_ref[...], preferred_element_type=f32)
         + b1c_ref[...])
    h = jnp.maximum(h, 0.0)                                           # ReLU (Dropout=id)
    o_ref[...] = (jnp.dot(h.astype(bf16), w2_ref[...], preferred_element_type=f32)
                  + b2_ref[...])


def encoder_conv_with_prior(x_nchw, prior, packed):
    """Fused forward pass.  x_nchw: (B, 1, 28, 28), prior: (B, esd)."""
    B, Cin, H, W = x_nchw.shape
    assert Cin == 1 and H == 28 and W == 28, "Encoder expects (B, 1, 28, 28) inputs"
    esd = packed["w2"].shape[1]
    nb = -(-B // TB)                      # number of batch tiles
    Bp = nb * TB

    # TODO(synk): the PyTorch `if torch.isnan(x).any(): itay = 29` branch is a no-op; skipped.
    # Batch padded to a multiple of TB; width lane-padded to 128 (zeros).  bf16 inputs.
    x2d = x_nchw.reshape(B * H, W).astype(jnp.float32)
    x2d = jnp.pad(x2d, ((0, (Bp - B) * H), (0, LANE - W))).astype(jnp.bfloat16)
    pr = jnp.pad(prior.astype(jnp.float32), ((0, Bp - B), (0, 0)))

    w_names = ("sh1", "m1", "t1", "sh2", "m2", "s2", "t2",
               "sh3", "m3", "t3", "wpa", "w1b", "b1c", "w2", "b2")
    w_args = [packed[k] for k in w_names]
    w_specs = [pl.BlockSpec(a.shape, lambda i: (0, 0)) for a in w_args]  # fetched once

    out = pl.pallas_call(
        _encoder_kernel,
        out_shape=jax.ShapeDtypeStruct((Bp, esd), jnp.float32),
        grid=(nb,),
        in_specs=[pl.BlockSpec((TB * H, LANE), lambda i: (i, 0)),    # x tile
                  pl.BlockSpec((TB, esd), lambda i: (i, 0))]          # prior tile
                 + w_specs,
        out_specs=pl.BlockSpec((TB, esd), lambda i: (i, 0)),
        compiler_params=pltpu.CompilerParams(
            dimension_semantics=("parallel",),          # megacore-shard batch tiles
            vmem_limit_bytes=32 * 1024 * 1024),
    )(x2d, pr, *w_args)
    return out[:B]


# ----------------------------------------------------------------------------
# Pure-JAX reference (for in-script correctness check) + params
# ----------------------------------------------------------------------------
def reference_forward(x_nchw, prior, params, *, bn_eps=1e-5):
    hi = jax.lax.Precision.HIGHEST

    def conv(x, w, b, stride, pad):
        y = jax.lax.conv_general_dilated(
            x, w, window_strides=(stride, stride),
            padding=[(pad, pad), (pad, pad)],
            dimension_numbers=("NCHW", "OIHW", "NCHW"), precision=hi)
        return y + b.reshape(1, -1, 1, 1)

    x = jnp.maximum(conv(x_nchw, params["w1"], params["b1"], 2, 1), 0.0)
    z = conv(x, params["w2"], params["b2"], 2, 1)
    z = ((z - params["bn_mean"].reshape(1, -1, 1, 1))
         / jnp.sqrt(params["bn_var"].reshape(1, -1, 1, 1) + bn_eps)
         * params["bn_gamma"].reshape(1, -1, 1, 1)
         + params["bn_beta"].reshape(1, -1, 1, 1))
    x = jnp.maximum(z, 0.0)
    x = jnp.maximum(conv(x, params["w3"], params["b3"], 2, 0), 0.0)
    xf = x.reshape(x.shape[0], -1)
    p = jnp.dot(prior, params["wp"], precision=hi) + params["bp"]
    comb = jnp.concatenate([p, xf], axis=1)
    h = jnp.maximum(jnp.dot(comb, params["wl1"], precision=hi) + params["bl1"], 0.0)
    return jnp.dot(h, params["wl2"], precision=hi) + params["bl2"]


def init_params(key, esd):
    ks = jax.random.split(key, 12)
    f32 = jnp.float32
    return {
        # conv weights in PyTorch layout (Cout, Cin, kh, kw)
        "w1": 0.1 * jax.random.normal(ks[0], (8, 1, 3, 3), f32),
        "b1": 0.1 * jax.random.normal(ks[1], (8,), f32),
        "w2": 0.1 * jax.random.normal(ks[2], (16, 8, 3, 3), f32),
        "b2": 0.1 * jax.random.normal(ks[3], (16,), f32),
        "w3": 0.1 * jax.random.normal(ks[4], (32, 16, 3, 3), f32),
        "b3": 0.1 * jax.random.normal(ks[5], (32,), f32),
        # BatchNorm2d(16): affine params + running stats (eval mode)
        "bn_gamma": 1.0 + 0.05 * jax.random.normal(ks[6], (16,), f32),
        "bn_beta": 0.05 * jax.random.normal(ks[7], (16,), f32),
        "bn_mean": 0.05 * jax.random.normal(ks[8], (16,), f32),
        "bn_var": jnp.abs(1.0 + 0.05 * jax.random.normal(ks[9], (16,), f32)),
        # linears stored as (in, out) for row-major matmul
        "wp": 0.1 * jax.random.normal(ks[10], (esd, 8), f32),
        "bp": 0.05 * jnp.ones((8,), f32),
        "wl1": 0.05 * jax.random.normal(ks[11], (296, 32), f32),
        "bl1": 0.02 * jnp.ones((32,), f32),
        "wl2": 0.1 * jax.random.normal(ks[0], (32, esd), f32),
        "bl2": jnp.zeros((esd,), f32),
    }


if __name__ == "__main__":
    # TODO(synk): Dropout is stochastic in train mode; implemented as eval-mode identity.
    encoded_space_dim = 4
    batch = 2

    key = jax.random.PRNGKey(0)
    k_x, k_p, k_w = jax.random.split(key, 3)

    # Input must be 28x28 so the flattened conv output is 288 (=> 296 after concat).
    x = jax.random.normal(k_x, (batch, 1, 28, 28), jnp.float32)
    prior = jax.random.normal(k_p, (batch, encoded_space_dim), jnp.float32)
    params = init_params(k_w, encoded_space_dim)

    packed = pack_params(params)              # one-time, batch-size-independent packing
    fwd = jax.jit(encoder_conv_with_prior)

    out = jax.block_until_ready(fwd(x, prior, packed))
    assert out.shape == (batch, encoded_space_dim)
    ref = jax.block_until_ready(reference_forward(x, prior, params))
    np.testing.assert_allclose(np.asarray(out), np.asarray(ref), rtol=3e-2, atol=3e-2)

    # Second check: non-multiple-of-8 batch with >1 grid tiles (exercises padding +
    # the parallel batch grid).
    b2 = 11
    x2 = jax.random.normal(jax.random.PRNGKey(1), (b2, 1, 28, 28), jnp.float32)
    p2 = jax.random.normal(jax.random.PRNGKey(2), (b2, encoded_space_dim), jnp.float32)
    out2 = jax.block_until_ready(fwd(x2, p2, packed))
    ref2 = jax.block_until_ready(reference_forward(x2, p2, params))
    np.testing.assert_allclose(np.asarray(out2), np.asarray(ref2), rtol=3e-2, atol=3e-2)

    print("KERNEL_OK")
</pallas_src>

<mosaic_0001>
module attributes {stable_mosaic.version = 11 : i64} {
  func.func @_encoder_kernel(%arg0: i32, %arg1: memref<224x128xbf16, #tpu.memory_space<vmem>>, %arg2: memref<8x4xf32, #tpu.memory_space<vmem>>, %arg3: memref<336x224xbf16, #tpu.memory_space<vmem>>, %arg4: memref<384x128xbf16, #tpu.memory_space<vmem>>, %arg5: memref<1x128xf32, #tpu.memory_space<vmem>>, %arg6: memref<168x112xbf16, #tpu.memory_space<vmem>>, %arg7: memref<384x128xbf16, #tpu.memory_space<vmem>>, %arg8: memref<1x128xf32, #tpu.memory_space<vmem>>, %arg9: memref<1x128xf32, #tpu.memory_space<vmem>>, %arg10: memref<72x56xbf16, #tpu.memory_space<vmem>>, %arg11: memref<384x128xbf16, #tpu.memory_space<vmem>>, %arg12: memref<1x128xf32, #tpu.memory_space<vmem>>, %arg13: memref<4x32xf32, #tpu.memory_space<vmem>>, %arg14: memref<384x32xbf16, #tpu.memory_space<vmem>>, %arg15: memref<1x32xf32, #tpu.memory_space<vmem>>, %arg16: memref<32x4xbf16, #tpu.memory_space<vmem>>, %arg17: memref<1x4xf32, #tpu.memory_space<vmem>>, %arg18: memref<8x4xf32, #tpu.memory_space<vmem>>) attributes {dimension_semantics = [#tpu.dimension_semantics<parallel>], iteration_bounds = array<i64: 1>, scalar_prefetch = 0 : i64, scratch_operands = 0 : i64, tpu.core_type = #tpu.core_type<tc>, window_params = [{transform_indices = @transform_0, window_bounds = array<i64: 224, 128>}, {transform_indices = @transform_1, window_bounds = array<i64: 8, 4>}, {pipeline_mode = #tpu.pipeline_mode<synchronous>, transform_indices = @transform_2, window_bounds = array<i64: 336, 224>}, {pipeline_mode = #tpu.pipeline_mode<synchronous>, transform_indices = @transform_3, window_bounds = array<i64: 384, 128>}, {pipeline_mode = #tpu.pipeline_mode<synchronous>, transform_indices = @transform_4, window_bounds = array<i64: 1, 128>}, {pipeline_mode = #tpu.pipeline_mode<synchronous>, transform_indices = @transform_5, window_bounds = array<i64: 168, 112>}, {pipeline_mode = #tpu.pipeline_mode<synchronous>, transform_indices = @transform_6, window_bounds = array<i64: 384, 128>}, {pipeline_mode = #tpu.pipeline_mode<synchronous>, transform_indices = @transform_7, window_bounds = array<i64: 1, 128>}, {pipeline_mode = #tpu.pipeline_mode<synchronous>, transform_indices = @transform_8, window_bounds = array<i64: 1, 128>}, {pipeline_mode = #tpu.pipeline_mode<synchronous>, transform_indices = @transform_9, window_bounds = array<i64: 72, 56>}, {pipeline_mode = #tpu.pipeline_mode<synchronous>, transform_indices = @transform_10, window_bounds = array<i64: 384, 128>}, {pipeline_mode = #tpu.pipeline_mode<synchronous>, transform_indices = @transform_11, window_bounds = array<i64: 1, 128>}, {pipeline_mode = #tpu.pipeline_mode<synchronous>, transform_indices = @transform_12, window_bounds = array<i64: 4, 32>}, {pipeline_mode = #tpu.pipeline_mode<synchronous>, transform_indices = @transform_13, window_bounds = array<i64: 384, 32>}, {pipeline_mode = #tpu.pipeline_mode<synchronous>, transform_indices = @transform_14, window_bounds = array<i64: 1, 32>}, {pipeline_mode = #tpu.pipeline_mode<synchronous>, transform_indices = @transform_15, window_bounds = array<i64: 32, 4>}, {pipeline_mode = #tpu.pipeline_mode<synchronous>, transform_indices = @transform_16, window_bounds = array<i64: 1, 4>}, {transform_indices = @transform_17, window_bounds = array<i64: 8, 4>}]} {
    %c0 = arith.constant 0 : index
    %c0_0 = arith.constant 0 : index
    %0 = vector.load %arg1[%c0, %c0_0] : memref<224x128xbf16, #tpu.memory_space<vmem>>, vector<224x128xbf16>
    %c0_1 = arith.constant 0 : index
    %c0_2 = arith.constant 0 : index
    %1 = vector.load %arg3[%c0_1, %c0_2] : memref<336x224xbf16, #tpu.memory_space<vmem>>, vector<336x224xbf16>
    %cst = arith.constant dense<0.000000e+00> : vector<336x128xf32>
    %2 = tpu.matmul %1, %0, %cst {dimension_numbers = #tpu.dot_dimension_numbers<[1], [0], [0], [1], [0, 0, 1, 1], [], []>} : vector<336x224xbf16>, vector<224x128xbf16>, vector<336x128xf32> -> vector<336x128xf32>
    %3 = vector.extract_strided_slice %2 {offsets = [0, 0], sizes = [112, 128], strides = [1, 1]} : vector<336x128xf32> to vector<112x128xf32>
    %4 = vector.extract_strided_slice %2 {offsets = [112, 0], sizes = [112, 128], strides = [1, 1]} : vector<336x128xf32> to vector<112x128xf32>
    %5 = vector.extract_strided_slice %2 {offsets = [224, 0], sizes = [112, 128], strides = [1, 1]} : vector<336x128xf32> to vector<112x128xf32>
    %6 = tpu.concatenate %3, %4, %5 in 1 : vector<112x128xf32>, vector<112x128xf32>, vector<112x128xf32> -> vector<112x384xf32>
    %7 = arith.truncf %6 : vector<112x384xf32> to vector<112x384xbf16>
    %c0_3 = arith.constant 0 : index
    %c0_4 = arith.constant 0 : index
    %8 = vector.load %arg4[%c0_3, %c0_4] : memref<384x128xbf16, #tpu.memory_space<vmem>>, vector<384x128xbf16>
    %cst_5 = arith.constant dense<0.000000e+00> : vector<112x128xf32>
    %9 = tpu.matmul %7, %8, %cst_5 {dimension_numbers = #tpu.dot_dimension_numbers<[1], [0], [0], [1], [0, 0, 1, 1], [], []>} : vector<112x384xbf16>, vector<384x128xbf16>, vector<112x128xf32> -> vector<112x128xf32>
    %c0_6 = arith.constant 0 : index
    %c0_7 = arith.constant 0 : index
    %10 = vector.load %arg5[%c0_6, %c0_7] : memref<1x128xf32, #tpu.memory_space<vmem>>, vector<1x128xf32>
    %11 = vector.broadcast %10 : vector<1x128xf32> to vector<112x128xf32>
    %12 = arith.addf %9, %11 : vector<112x128xf32>
    %cst_8 = arith.constant 0.000000e+00 : f32
    %13 = vector.broadcast %cst_8 : f32 to vector<112x128xf32>
    %14 = arith.maximumf %12, %13 : vector<112x128xf32>
    %15 = arith.truncf %14 : vector<112x128xf32> to vector<112x128xbf16>
    %c0_9 = arith.constant 0 : index
    %c0_10 = arith.constant 0 : index
    %16 = vector.load %arg6[%c0_9, %c0_10] : memref<168x112xbf16, #tpu.memory_space<vmem>>, vector<168x112xbf16>
    %cst_11 = arith.constant dense<0.000000e+00> : vector<168x128xf32>
    %17 = tpu.matmul %16, %15, %cst_11 {dimension_numbers = #tpu.dot_dimension_numbers<[1], [0], [0], [1], [0, 0, 1, 1], [], []>} : vector<168x112xbf16>, vector<112x128xbf16>, vector<168x128xf32> -> vector<168x128xf32>
    %18 = vector.extract_strided_slice %17 {offsets = [0, 0], sizes = [56, 128], strides = [1, 1]} : vector<168x128xf32> to vector<56x128xf32>
    %19 = vector.extract_strided_slice %17 {offsets = [56, 0], sizes = [56, 128], strides = [1, 1]} : vector<168x128xf32> to vector<56x128xf32>
    %20 = vector.extract_strided_slice %17 {offsets = [112, 0], sizes = [56, 128], strides = [1, 1]} : vector<168x128xf32> to vector<56x128xf32>
    %21 = tpu.concatenate %18, %19, %20 in 1 : vector<56x128xf32>, vector<56x128xf32>, vector<56x128xf32> -> vector<56x384xf32>
    %22 = arith.truncf %21 : vector<56x384xf32> to vector<56x384xbf16>
    %c0_12 = arith.constant 0 : index
    %c0_13 = arith.constant 0 : index
    %23 = vector.load %arg7[%c0_12, %c0_13] : memref<384x128xbf16, #tpu.memory_space<vmem>>, vector<384x128xbf16>
    %cst_14 = arith.constant dense<0.000000e+00> : vector<56x128xf32>
    %24 = tpu.matmul %22, %23, %cst_14 {dimension_numbers = #tpu.dot_dimension_numbers<[1], [0], [0], [1], [0, 0, 1, 1], [], []>} : vector<56x384xbf16>, vector<384x128xbf16>, vector<56x128xf32> -> vector<56x128xf32>
    %c0_15 = arith.constant 0 : index
    %c0_16 = arith.constant 0 : index
    %25 = vector.load %arg8[%c0_15, %c0_16] : memref<1x128xf32, #tpu.memory_space<vmem>>, vector<1x128xf32>
    %26 = vector.broadcast %25 : vector<1x128xf32> to vector<56x128xf32>
    %27 = arith.mulf %24, %26 : vector<56x128xf32>
    %c0_17 = arith.constant 0 : index
    %c0_18 = arith.constant 0 : index
    %28 = vector.load %arg9[%c0_17, %c0_18] : memref<1x128xf32, #tpu.memory_space<vmem>>, vector<1x128xf32>
    %29 = vector.broadcast %28 : vector<1x128xf32> to vector<56x128xf32>
    %30 = arith.addf %27, %29 : vector<56x128xf32>
    %cst_19 = arith.constant 0.000000e+00 : f32
    %31 = vector.broadcast %cst_19 : f32 to vector<56x128xf32>
    %32 = arith.maximumf %30, %31 : vector<56x128xf32>
    %33 = arith.truncf %32 : vector<56x128xf32> to vector<56x128xbf16>
    %c0_20 = arith.constant 0 : index
    %c0_21 = arith.constant 0 : index
    %34 = vector.load %arg10[%c0_20, %c0_21] : memref<72x56xbf16, #tpu.memory_space<vmem>>, vector<72x56xbf16>
    %cst_22 = arith.constant dense<0.000000e+00> : vector<72x128xf32>
    %35 = tpu.matmul %34, %33, %cst_22 {dimension_numbers = #tpu.dot_dimension_numbers<[1], [0], [0], [1], [0, 0, 1, 1], [], []>} : vector<72x56xbf16>, vector<56x128xbf16>, vector<72x128xf32> -> vector<72x128xf32>
    %36 = vector.extract_strided_slice %35 {offsets = [0, 0], sizes = [24, 128], strides = [1, 1]} : vector<72x128xf32> to vector<24x128xf32>
    %37 = vector.extract_strided_slice %35 {offsets = [24, 0], sizes = [24, 128], strides = [1, 1]} : vector<72x128xf32> to vector<24x128xf32>
    %38 = vector.extract_strided_slice %35 {offsets = [48, 0], sizes = [24, 128], strides = [1, 1]} : vector<72x128xf32> to vector<24x128xf32>
    %39 = tpu.concatenate %36, %37, %38 in 1 : vector<24x128xf32>, vector<24x128xf32>, vector<24x128xf32> -> vector<24x384xf32>
    %40 = arith.truncf %39 : vector<24x384xf32> to vector<24x384xbf16>
    %c0_23 = arith.constant 0 : index
    %c0_24 = arith.constant 0 : index
    %41 = vector.load %arg11[%c0_23, %c0_24] : memref<384x128xbf16, #tpu.memory_space<vmem>>, vector<384x128xbf16>
    %cst_25 = arith.constant dense<0.000000e+00> : vector<24x128xf32>
    %42 = tpu.matmul %40, %41, %cst_25 {dimension_numbers = #tpu.dot_dimension_numbers<[1], [0], [0], [1], [0, 0, 1, 1], [], []>} : vector<24x384xbf16>, vector<384x128xbf16>, vector<24x128xf32> -> vector<24x128xf32>
    %c0_26 = arith.constant 0 : index
    %c0_27 = arith.constant 0 : index
    %43 = vector.load %arg12[%c0_26, %c0_27] : memref<1x128xf32, #tpu.memory_space<vmem>>, vector<1x128xf32>
    %44 = vector.broadcast %43 : vector<1x128xf32> to vector<24x128xf32>
    %45 = arith.addf %42, %44 : vector<24x128xf32>
    %cst_28 = arith.constant 0.000000e+00 : f32
    %46 = vector.broadcast %cst_28 : f32 to vector<24x128xf32>
    %47 = arith.maximumf %45, %46 : vector<24x128xf32>
    %48 = vector.extract_strided_slice %47 {offsets = [0, 0], sizes = [8, 128], strides = [1, 1]} : vector<24x128xf32> to vector<8x128xf32>
    %49 = vector.extract_strided_slice %47 {offsets = [8, 0], sizes = [8, 128], strides = [1, 1]} : vector<24x128xf32> to vector<8x128xf32>
    %50 = vector.extract_strided_slice %47 {offsets = [16, 0], sizes = [8, 128], strides = [1, 1]} : vector<24x128xf32> to vector<8x128xf32>
    %51 = tpu.concatenate %48, %49, %50 in 1 : vector<8x128xf32>, vector<8x128xf32>, vector<8x128xf32> -> vector<8x384xf32>
    %52 = arith.truncf %51 : vector<8x384xf32> to vector<8x384xbf16>
    %c0_29 = arith.constant 0 : index
    %c0_30 = arith.constant 0 : index
    %53 = vector.load %arg2[%c0_29, %c0_30] : memref<8x4xf32, #tpu.memory_space<vmem>>, vector<8x4xf32>
    %c0_31 = arith.constant 0 : index
    %c0_32 = arith.constant 0 : index
    %54 = vector.load %arg13[%c0_31, %c0_32] : memref<4x32xf32, #tpu.memory_space<vmem>>, vector<4x32xf32>
    %cst_33 = arith.constant dense<0.000000e+00> : vector<8x32xf32>
    %55 = tpu.matmul %53, %54, %cst_33 {dimension_numbers = #tpu.dot_dimension_numbers<[1], [0], [0], [1], [0, 0, 1, 1], [], []>} : vector<8x4xf32>, vector<4x32xf32>, vector<8x32xf32> -> vector<8x32xf32>
    %c0_34 = arith.constant 0 : index
    %c0_35 = arith.constant 0 : index
    %56 = vector.load %arg14[%c0_34, %c0_35] : memref<384x32xbf16, #tpu.memory_space<vmem>>, vector<384x32xbf16>
    %cst_36 = arith.constant dense<0.000000e+00> : vector<8x32xf32>
    %57 = tpu.matmul %52, %56, %cst_36 {dimension_numbers = #tpu.dot_dimension_numbers<[1], [0], [0], [1], [0, 0, 1, 1], [], []>} : vector<8x384xbf16>, vector<384x32xbf16>, vector<8x32xf32> -> vector<8x32xf32>
    %58 = arith.addf %55, %57 : vector<8x32xf32>
    %c0_37 = arith.constant 0 : index
    %c0_38 = arith.constant 0 : index
    %59 = vector.load %arg15[%c0_37, %c0_38] : memref<1x32xf32, #tpu.memory_space<vmem>>, vector<1x32xf32>
    %60 = vector.broadcast %59 : vector<1x32xf32> to vector<8x32xf32>
    %61 = arith.addf %58, %60 : vector<8x32xf32>
    %cst_39 = arith.constant 0.000000e+00 : f32
    %62 = vector.broadcast %cst_39 : f32 to vector<8x32xf32>
    %63 = arith.maximumf %61, %62 : vector<8x32xf32>
    %64 = arith.truncf %63 : vector<8x32xf32> to vector<8x32xbf16>
    %c0_40 = arith.constant 0 : index
    %c0_41 = arith.constant 0 : index
    %65 = vector.load %arg16[%c0_40, %c0_41] : memref<32x4xbf16, #tpu.memory_space<vmem>>, vector<32x4xbf16>
    %cst_42 = arith.constant dense<0.000000e+00> : vector<8x4xf32>
    %66 = tpu.matmul %64, %65, %cst_42 {dimension_numbers = #tpu.dot_dimension_numbers<[1], [0], [0], [1], [0, 0, 1, 1], [], []>} : vector<8x32xbf16>, vector<32x4xbf16>, vector<8x4xf32> -> vector<8x4xf32>
    %c0_43 = arith.constant 0 : index
    %c0_44 = arith.constant 0 : index
    %67 = vector.load %arg17[%c0_43, %c0_44] : memref<1x4xf32, #tpu.memory_space<vmem>>, vector<1x4xf32>
    %68 = vector.broadcast %67 : vector<1x4xf32> to vector<8x4xf32>
    %69 = arith.addf %66, %68 : vector<8x4xf32>
    %c0_45 = arith.constant 0 : index
    %c0_46 = arith.constant 0 : index
    %70 = vector.load %arg18[%c0_45, %c0_46] : memref<8x4xf32, #tpu.memory_space<vmem>>, vector<8x4xf32>
    tpu.vector_store %arg18[%c0_45, %c0_46], %69 {strides = array<i32>} : memref<8x4xf32, #tpu.memory_space<vmem>>, vector<8x4xf32>,
    return
  }
  func.func @transform_0(%arg0: i32) -> (i32, i32) {
    %c0_i32 = arith.constant 0 : i32
    %c0_i32_0 = arith.constant 0 : i32
    return %arg0, %c0_i32 : i32, i32
  }
  func.func @transform_1(%arg0: i32) -> (i32, i32) {
    %c0_i32 = arith.constant 0 : i32
    %c0_i32_0 = arith.constant 0 : i32
    return %arg0, %c0_i32 : i32, i32
  }
  func.func @transform_2(%arg0: i32) -> (i32, i32) {
    %c0_i32 = arith.constant 0 : i32
    %c0_i32_0 = arith.constant 0 : i32
    %c0_i32_1 = arith.constant 0 : i32
    return %c0_i32, %c0_i32_0 : i32, i32
  }
  func.func @transform_3(%arg0: i32) -> (i32, i32) {
    %c0_i32 = arith.constant 0 : i32
    %c0_i32_0 = arith.constant 0 : i32
    %c0_i32_1 = arith.constant 0 : i32
    return %c0_i32, %c0_i32_0 : i32, i32
  }
  func.func @transform_4(%arg0: i32) -> (i32, i32) {
    %c0_i32 = arith.constant 0 : i32
    %c0_i32_0 = arith.constant 0 : i32
    %c0_i32_1 = arith.constant 0 : i32
    return %c0_i32, %c0_i32_0 : i32, i32
  }
  func.func @transform_5(%arg0: i32) -> (i32, i32) {
    %c0_i32 = arith.constant 0 : i32
    %c0_i32_0 = arith.constant 0 : i32
    %c0_i32_1 = arith.constant 0 : i32
    return %c0_i32, %c0_i32_0 : i32, i32
  }
  func.func @transform_6(%arg0: i32) -> (i32, i32) {
    %c0_i32 = arith.constant 0 : i32
    %c0_i32_0 = arith.constant 0 : i32
    %c0_i32_1 = arith.constant 0 : i32
    return %c0_i32, %c0_i32_0 : i32, i32
  }
  func.func @transform_7(%arg0: i32) -> (i32, i32) {
    %c0_i32 = arith.constant 0 : i32
    %c0_i32_0 = arith.constant 0 : i32
    %c0_i32_1 = arith.constant 0 : i32
    return %c0_i32, %c0_i32_0 : i32, i32
  }
  func.func @transform_8(%arg0: i32) -> (i32, i32) {
    %c0_i32 = arith.constant 0 : i32
    %c0_i32_0 = arith.constant 0 : i32
    %c0_i32_1 = arith.constant 0 : i32
    return %c0_i32, %c0_i32_0 : i32, i32
  }
  func.func @transform_9(%arg0: i32) -> (i32, i32) {
    %c0_i32 = arith.constant 0 : i32
    %c0_i32_0 = arith.constant 0 : i32
    %c0_i32_1 = arith.constant 0 : i32
    return %c0_i32, %c0_i32_0 : i32, i32
  }
  func.func @transform_10(%arg0: i32) -> (i32, i32) {
    %c0_i32 = arith.constant 0 : i32
    %c0_i32_0 = arith.constant 0 : i32
    %c0_i32_1 = arith.constant 0 : i32
    return %c0_i32, %c0_i32_0 : i32, i32
  }
  func.func @transform_11(%arg0: i32) -> (i32, i32) {
    %c0_i32 = arith.constant 0 : i32
    %c0_i32_0 = arith.constant 0 : i32
    %c0_i32_1 = arith.constant 0 : i32
    return %c0_i32, %c0_i32_0 : i32, i32
  }
  func.func @transform_12(%arg0: i32) -> (i32, i32) {
    %c0_i32 = arith.constant 0 : i32
    %c0_i32_0 = arith.constant 0 : i32
    %c0_i32_1 = arith.constant 0 : i32
    return %c0_i32, %c0_i32_0 : i32, i32
  }
  func.func @transform_13(%arg0: i32) -> (i32, i32) {
    %c0_i32 = arith.constant 0 : i32
    %c0_i32_0 = arith.constant 0 : i32
    %c0_i32_1 = arith.constant 0 : i32
    return %c0_i32, %c0_i32_0 : i32, i32
  }
  func.func @transform_14(%arg0: i32) -> (i32, i32) {
    %c0_i32 = arith.constant 0 : i32
    %c0_i32_0 = arith.constant 0 : i32
    %c0_i32_1 = arith.constant 0 : i32
    return %c0_i32, %c0_i32_0 : i32, i32
  }
  func.func @transform_15(%arg0: i32) -> (i32, i32) {
    %c0_i32 = arith.constant 0 : i32
    %c0_i32_0 = arith.constant 0 : i32
    %c0_i32_1 = arith.constant 0 : i32
    return %c0_i32, %c0_i32_0 : i32, i32
  }
  func.func @transform_16(%arg0: i32) -> (i32, i32) {
    %c0_i32 = arith.constant 0 : i32
    %c0_i32_0 = arith.constant 0 : i32
    %c0_i32_1 = arith.constant 0 : i32
    return %c0_i32, %c0_i32_0 : i32, i32
  }
  func.func @transform_17(%arg0: i32) -> (i32, i32) {
    %c0_i32 = arith.constant 0 : i32
    %c0_i32_0 = arith.constant 0 : i32
    return %arg0, %c0_i32 : i32, i32
  }
}

</mosaic_0001>

<bundles_post_ra>
// kernel: encoder_conv_with_prior.1
= control target key start
LH: loop header
LB: loop body
LE: loop exit
PB: predicated region body
PF: predicated region fallthrough
CT: control target
= control target key end

     0   :  { %s3686_s0 = inlined_call_operand.vmem [shape: bf16[224,128], index: 0, kind: input, shape index: {}]   ;;  %s3687_s1 = inlined_call_operand.vmem [shape: f32[8,4], index: 1, kind: input, shape index: {}]   ;;  %s3688_s2 = inlined_call_operand.hbm [shape: bf16[336,224], index: 2, kind: input, shape index: {}]   ;;  %s3689_s3 = inlined_call_operand.vmem [shape: bf16[384,128], index: 3, kind: input, shape index: {}]   ;;  %s3690_s4 = inlined_call_operand.vmem [shape: f32[1,128], index: 4, kind: input, shape index: {}]   ;;  %s3691_s5 = inlined_call_operand.vmem [shape: bf16[168,112], index: 5, kind: input, shape index: {}]   ;;  %s3692_s6 = inlined_call_operand.hbm [shape: bf16[384,128], index: 6, kind: input, shape index: {}]   ;;  %s3693_s7 = inlined_call_operand.vmem [shape: f32[1,128], index: 7, kind: input, shape index: {}]   ;;  %s3694_s8 = inlined_call_operand.vmem [shape: f32[1,128], index: 8, kind: input, shape index: {}]   ;;  %s3695_s9 = inlined_call_operand.vmem [shape: bf16[72,56], index: 9, kind: input, shape index: {}]   ;;  %s3696_s10 = inlined_call_operand.hbm [shape: bf16[384,128], index: 10, kind: input, shape index: {}]   ;;  %s3697_s11 = inlined_call_operand.vmem [shape: f32[1,128], index: 11, kind: input, shape index: {}]   ;;  %s3698_s12 = inlined_call_operand.vmem [shape: f32[4,32], index: 12, kind: input, shape index: {}]   ;;  %s3699_s13 = inlined_call_operand.vmem [shape: bf16[384,32], index: 13, kind: input, shape index: {}]   ;;  %s3700_s14 = inlined_call_operand.vmem [shape: f32[1,32], index: 14, kind: input, shape index: {}]   ;;  %s3701_s15 = inlined_call_operand.vmem [shape: bf16[32,4], index: 15, kind: input, shape index: {}]   ;;  %s3702_s16 = inlined_call_operand.vmem [shape: f32[1,4], index: 16, kind: input, shape index: {}]   ;;  %s3703_s17 = inlined_call_operand.vmem [shape: f32[8,4], index: 17, kind: output, shape index: {}]  }
   0x1   :  { %3705 = sst [smem:[#allocation9_spill]] %s3686_s0 }
   0x2   :  { %3706 = sst [smem:[#allocation10_spill]] %s3687_s1 }
   0x3   :  { %22 = vsyncpa [#allocation3], 0 }
   0x4   :  { %23 = vsyncpa [#allocation5], 0  ;;  %s51_s26 = sshll.u32 %s3692_s6, 4  ;;  %s3228_s27 = smov [#allocation4]   ;;  %s52_s26 = int_to_ptr.hbm [resolvable:$true] %s51_s26 }
   0x5   :  { %s53_s28 = sshll.u32 %s3228_s27, 4  ;;  %s32_s30 = sshll.u32 %s3688_s2, 4  ;;  %s54_s28 = int_to_ptr.vmem [resolvable:$true] %s53_s28  ;;  %s33_s30 = int_to_ptr.hbm [resolvable:$true] %s32_s30 }
   0x6   :  { %s3229_s18 = smov 64   ;;  %s3230_s19 = smov 4  }
   0x7   :  { %59 = dma.hbm_to_vmem [thread:$0]  %s52_s26, 3072, %s54_s28, [#allocation5], %s3229_s18, %s3229_s18, %s3230_s19  }
   0x8   :  { %s3231_s1 = smov [#allocation2]   ;;  %s3232_s21 = smov 128  }
   0x9   :  { %s34_s20 = sshll.u32 %s3231_s1, 4  ;;  %s3233_s22 = smov 8   ;;  %s35_s20 = int_to_ptr.vmem [resolvable:$true] %s34_s20 }
   0xa   :  { %40 = dma.hbm_to_vmem [thread:$0]  %s33_s30, 5376, %s35_s20, [#allocation3], %s3232_s21, %s3232_s21, %s3233_s22  }
   0xb   :  { %s70_s24 = sshll.u32 %s3696_s10, 4  ;;  %s3234_s25 = smov [#allocation6]   ;;  %s71_s24 = int_to_ptr.hbm [resolvable:$true] %s70_s24 }
   0xc   :  { %s72_s27 = sshll.u32 %s3234_s25, 4  ;;  %s73_s27 = int_to_ptr.vmem [resolvable:$true] %s72_s27 }
   0xd   :  { %78 = dma.hbm_to_vmem [thread:$0]  %s71_s24, 3072, %s73_s27, [#allocation5], %s3229_s18, %s3229_s18, %s3230_s19  }
   0xe   :  { %3224 = dma.done.wait [#allocation3], 5376  }
   0xf   :  { %3225 = vsyncadd [#allocation3], 4294961920 }
  0x10   :  { %3226 = dma.done.wait [#allocation5], 6144  }
  0x11   :  { %3227 = vsyncadd [#allocation5], 4294961152  ;;  %s3707_s28 = sld [smem:[#allocation9_spill]]  ;;  %v2985_v12 = vld [vmem:[#allocation2 + $0x4] sm:$0xf]  ;;  %vm447_vm0 = vcmask 785408  }
  0x12   :  { %v2263_v13 = vld [vmem:[#allocation2 + $0x8] sm:$0xf0]  ;;  %v2261_v17 = vld [vmem:[#allocation2] sm:$0xf]  ;;  %v2986_v18 = vld [vmem:[#allocation2 + $0x4] sm:$0xf0] }
  0x13   :  { %v2266_v14 = vor.u32 %v2985_v12, %v2263_v13  ;;  %v2262_v19 = vor.u32 %v2986_v18, %v2261_v17  ;;  %v2987_v20 = vld [vmem:[#allocation2 + $0x14] sm:$0xf]  ;;  %v2271_v21 = vld [vmem:[#allocation2 + $0x18] sm:$0xf0]  ;;  %v2269_v23 = vld [vmem:[#allocation2 + $0x10] sm:$0xf] }
  0x14   :  { %v2274_v22 = vor.u32 %v2987_v20, %v2271_v21  ;;  %v2988_v24 = vld [vmem:[#allocation2 + $0x14] sm:$0xf0]  ;;  %v2989_v26 = vld [vmem:[#allocation2 + $0x24] sm:$0xf]  ;;  %v2279_v27 = vld [vmem:[#allocation2 + $0x28] sm:$0xf0] }
  0x15   :  { %v2270_v25 = vor.u32 %v2988_v24, %v2269_v23  ;;  %v2282_v28 = vor.u32 %v2989_v26, %v2279_v27  ;;  %v2277_v29 = vld [vmem:[#allocation2 + $0x20] sm:$0xf]  ;;  %v2990_v30 = vld [vmem:[#allocation2 + $0x24] sm:$0xf0]  ;;  %v2991_v32 = vld [vmem:[#allocation2 + $0x34] sm:$0xf] }
  0x16   :  { %v2278_v31 = vor.u32 %v2990_v30, %v2277_v29  ;;  %v2287_v33 = vld [vmem:[#allocation2 + $0x38] sm:$0xf0]  ;;  %v2285_v35 = vld [vmem:[#allocation2 + $0x30] sm:$0xf]  ;;  %v2992_v36 = vld [vmem:[#allocation2 + $0x34] sm:$0xf0] }
  0x17   :  { %v2978_v0 = vld [vmem:[%s3707_s28 + $0x38] sm:$0xff]  ;;  %v2984_v1 = vld [vmem:[%s3707_s28 + $0x68] sm:$0xff]  ;;  %v2977_v2 = vld [vmem:[%s3707_s28 + $0x30] sm:$0xff]  ;;  %v2290_v34 = vor.u32 %v2991_v32, %v2287_v33  ;;  %v2286_v37 = vor.u32 %v2992_v36, %v2285_v35  ;;  %vm1183_vm1 = vcmask 916480   ;;  %vm1649_vm2 = vcmask 1043456  }
  0x18   :  { %511 = vmatpush.bf16.msra.mxu0 %v2978_v0  ;;  %627 = vmatpush.bf16.msra.mxu1 %v2984_v1  ;;  %v2983_v3 = vld [vmem:[%s3707_s28 + $0x60] sm:$0xff]  ;;  %v2976_v4 = vld [vmem:[%s3707_s28 + $0x28] sm:$0xff]  ;;  %v2982_v5 = vld [vmem:[%s3707_s28 + $0x58] sm:$0xff]  ;;  %vm1633_vm3 = vcmask 457728   ;;  %vm2181_vm4 = vcmask 31744   ;;  %vm2235_vm5 = vcmask 261120  }
  0x19   :  { %v2975_v6 = vld [vmem:[%s3707_s28 + $0x20] sm:$0xff]  ;;  %v2981_v7 = vld [vmem:[%s3707_s28 + $0x50] sm:$0xff]  ;;  %v2974_v8 = vld [vmem:[%s3707_s28 + $0x18] sm:$0xff] }
  0x1a   :  { %v2980_v9 = vld [vmem:[%s3707_s28 + $0x48] sm:$0xff]  ;;  %v2973_v10 = vld [vmem:[%s3707_s28 + $0x10] sm:$0xff]  ;;  %v2979_v11 = vld [vmem:[%s3707_s28 + $0x40] sm:$0xff] }
  0x1b   :  { %v2972_v15 = vld [vmem:[%s3707_s28 + $0x8] sm:$0xff]  ;;  %v2971_v16 = vld [vmem:[%s3707_s28] sm:$0xff]  ;;  %v2995_v44 = vld [vmem:[#allocation2 + $0x54] sm:$0xf] }
  0x1c   :  { %512 = vmatpush.bf16.msra.mxu0 %v2977_v2  ;;  %628 = vmatpush.bf16.msra.mxu1 %v2983_v3  ;;  %v2993_v38 = vld [vmem:[#allocation2 + $0x44] sm:$0xf]  ;;  %v2295_v39 = vld [vmem:[#allocation2 + $0x48] sm:$0xf0]  ;;  %v2293_v41 = vld [vmem:[#allocation2 + $0x40] sm:$0xf] }
  0x1d   :  { %v2298_v40 = vor.u32 %v2993_v38, %v2295_v39  ;;  %v2994_v42 = vld [vmem:[#allocation2 + $0x44] sm:$0xf0]  ;;  %v2303_v45 = vld [vmem:[#allocation2 + $0x58] sm:$0xf0]  ;;  %v2301_v48 = vld [vmem:[#allocation2 + $0x50] sm:$0xf] }
  0x1e   :  { %v2294_v43 = vor.u32 %v2994_v42, %v2293_v41  ;;  %v2306_v46 = vor.u32 %v2995_v44, %v2303_v45  ;;  %v3034_v47 = vld [vmem:[%s3689_s3 + $0x38] sm:$0xff]  ;;  %v3033_v50 = vld [vmem:[%s3689_s3 + $0x30] sm:$0xff]  ;;  %v3032_v52 = vld [vmem:[%s3689_s3 + $0x28] sm:$0xff] }
  0x1f   :  { %v2996_v49 = vld [vmem:[#allocation2 + $0x54] sm:$0xf0]  ;;  %956 = vmatpush.bf16.msra.mxu2 %v3034_v47  ;;  %v2997_v53 = vld [vmem:[#allocation2 + $0x64] sm:$0xf]  ;;  %v2311_v54 = vld [vmem:[#allocation2 + $0x68] sm:$0xf0] }
  0x20   :  { %513 = vmatpush.bf16.msra.mxu0 %v2976_v4  ;;  %629 = vmatpush.bf16.msra.mxu1 %v2982_v5  ;;  %v2302_v51 = vor.u32 %v2996_v49, %v2301_v48  ;;  %v2314_v55 = vor.u32 %v2997_v53, %v2311_v54  ;;  %v3031_v56 = vld [vmem:[%s3689_s3 + $0x20] sm:$0xff]  ;;  %v3030_v57 = vld [vmem:[%s3689_s3 + $0x18] sm:$0xff]  ;;  %v2998_v59 = vld [vmem:[#allocation2 + $0x64] sm:$0xf0] }
  0x21   :  { %v2309_v58 = vld [vmem:[#allocation2 + $0x60] sm:$0xf]  ;;  %v3029_v61 = vld [vmem:[%s3689_s3 + $0x10] sm:$0xff]  ;;  %v3028_v62 = vld [vmem:[%s3689_s3 + $0x8] sm:$0xff] }
  0x22   :  { %v2310_v60 = vor.u32 %v2998_v59, %v2309_v58  ;;  %v2999_v63 = vld [vmem:[#allocation2 + $0x74] sm:$0xf]  ;;  %v2319_v0 = vld [vmem:[#allocation2 + $0x78] sm:$0xf0]  ;;  %v3027_v2 = vld [vmem:[%s3689_s3] sm:$0xff] }
  0x23   :  { %957 = vmatpush.bf16.msra.mxu2 %v3033_v50  ;;  %v2322_v1 = vor.u32 %v2999_v63, %v2319_v0  ;;  %v2317_v3 = vld [vmem:[#allocation2 + $0x70] sm:$0xf]  ;;  %v3000_v4 = vld [vmem:[#allocation2 + $0x74] sm:$0xf0]  ;;  %v2343_v29 = vld [vmem:[#allocation2 + $0xa8] sm:$0xf0] }
  0x24   :  { %514 = vmatpush.bf16.msra.mxu0 %v2975_v6  ;;  %630 = vmatpush.bf16.msra.mxu1 %v2981_v7  ;;  %v2318_v5 = vor.u32 %v3000_v4, %v2317_v3  ;;  %v3001_v6 = vld [vmem:[#allocation2 + $0x84] sm:$0xf]  ;;  %v2327_v7 = vld [vmem:[#allocation2 + $0x88] sm:$0xf0]  ;;  %v2333_v23 = vld [vmem:[#allocation2 + $0x90] sm:$0xf] }
  0x25   :  { %v3004_v24 = vld [vmem:[#allocation2 + $0x94] sm:$0xf0]  ;;  %v2341_v36 = vld [vmem:[#allocation2 + $0xa0] sm:$0xf]  ;;  %v3007_v41 = vld [vmem:[#allocation2 + $0xb4] sm:$0xf] }
  0x26   :  { %v2351_v42 = vld [vmem:[#allocation2 + $0xb8] sm:$0xf0]  ;;  %v2349_v49 = vld [vmem:[#allocation2 + $0xb0] sm:$0xf]  ;;  %v3008_v50 = vld [vmem:[#allocation2 + $0xb4] sm:$0xf0] }
  0x27   :  { %958 = vmatpush.bf16.msra.mxu2 %v3032_v52  ;;  %v3009_v54 = vld [vmem:[#allocation2 + $0xc4] sm:$0xf]  ;;  %v3010_v63 = vld [vmem:[#allocation2 + $0xc4] sm:$0xf0]  ;;  %v3042_v0 = vld [vmem:[%s3689_s3 + $0x78] sm:$0xff] }
  0x28   :  { %515 = vmatpush.bf16.msra.mxu0 %v2974_v8  ;;  %631 = vmatpush.bf16.msra.mxu1 %v2980_v9  ;;  %v2330_v8 = vor.u32 %v3001_v6, %v2327_v7  ;;  %v3041_v4 = vld [vmem:[%s3689_s3 + $0x70] sm:$0xff]  ;;  %v2367_v7 = vld [vmem:[#allocation2 + $0xd8] sm:$0xf0] }
  0x29   :  { %1000 = vmatpush.bf16.msra.mxu3 %v3042_v0  ;;  %v3011_v6 = vld [vmem:[#allocation2 + $0xd4] sm:$0xf]  ;;  %v2399_v0 = vld [vmem:[#allocation2 + $0x118] sm:$0xf0] }
  0x2b   :  { %959 = vmatpush.bf16.msra.mxu2 %v3031_v56 }
  0x2c   :  { %516 = vmatpush.bf16.msra.mxu0 %v2973_v10  ;;  %632 = vmatpush.bf16.msra.mxu1 %v2979_v11  ;;  %v2325_v10 = vld [vmem:[#allocation2 + $0x80] sm:$0xf]  ;;  %v3002_v11 = vld [vmem:[#allocation2 + $0x84] sm:$0xf0] }
  0x2d   :  { %v2326_v12 = vor.u32 %v3002_v11, %v2325_v10  ;;  %1001 = vmatpush.bf16.msra.mxu3 %v3041_v4  ;;  %v3039_v11 = vld [vmem:[%s3689_s3 + $0x60] sm:$0xff] }
  0x2f   :  { %2483 = vmatmul.msk.bf16.vlgmr.msra.gmra.mxu1 %vm447_vm0, %v2266_v14  ;;  %960 = vmatpush.bf16.msra.mxu2 %v3030_v57 }
  0x30   :  { %517 = vmatpush.bf16.msra.mxu0 %v2972_v15  ;;  %v3003_v15 = vld [vmem:[#allocation2 + $0x94] sm:$0xf] }
  0x33   :  { %961 = vmatpush.bf16.msra.mxu2 %v3029_v61 }
  0x34   :  { %518 = vmatpush.bf16.msra.mxu0 %v2971_v16  ;;  %v2335_v16 = vld [vmem:[#allocation2 + $0x98] sm:$0xf0] }
  0x35   :  { %v2338_v17 = vor.u32 %v3003_v15, %v2335_v16  ;;  %v2365_v15 = vld [vmem:[#allocation2 + $0xd0] sm:$0xf]  ;;  %v3012_v16 = vld [vmem:[#allocation2 + $0xd4] sm:$0xf0] }
  0x37   :  { %519 = vmatmul.bf16.vlgmr.msra.gmra.mxu0 %v2262_v19  ;;  %962 = vmatpush.bf16.msra.mxu2 %v3028_v62  ;;  %v2357_v62 = vld [vmem:[#allocation2 + $0xc0] sm:$0xf] }
  0x3b   :  { %963 = vmatpush.bf16.msra.mxu2 %v3027_v2 }
  0x3f   :  { %2484 = vmatmul.msk.bf16.gmra.mxu1 %vm447_vm0, %v2274_v22 }
  0x47   :  { %524 = vmatmul.bf16.gmra.mxu0 %v2270_v25  ;;  %v2334_v25 = vor.u32 %v3004_v24, %v2333_v23  ;;  %v3013_v23 = vld [vmem:[#allocation2 + $0xe4] sm:$0xf]  ;;  %v2375_v24 = vld [vmem:[#allocation2 + $0xe8] sm:$0xf0] }
  0x4f   :  { %2485 = vmatmul.msk.bf16.gmra.mxu1 %vm447_vm0, %v2282_v28  ;;  %v3005_v28 = vld [vmem:[#allocation2 + $0xa4] sm:$0xf] }
  0x50   :  { %v2346_v30 = vor.u32 %v3005_v28, %v2343_v29  ;;  %v3035_v28 = vld [vmem:[%s3689_s3 + $0x40] sm:$0xff] }
  0x57   :  { %529 = vmatmul.bf16.gmra.mxu0 %v2278_v31 }
  0x5f   :  { %2486 = vmatmul.msk.bf16.gmra.mxu1 %vm447_vm0, %v2290_v34 }
  0x67   :  { %534 = vmatmul.bf16.gmra.mxu0 %v2286_v37  ;;  %v3006_v37 = vld [vmem:[#allocation2 + $0xa4] sm:$0xf0] }
  0x68   :  { %v2342_v38 = vor.u32 %v3006_v37, %v2341_v36  ;;  %v3015_v37 = vld [vmem:[#allocation2 + $0xf4] sm:$0xf] }
  0x6f   :  { %2487 = vmatmul.msk.bf16.gmra.mxu1 %vm447_vm0, %v2298_v40 }
  0x77   :  { %539 = vmatmul.bf16.gmra.mxu0 %v2294_v43  ;;  %v2354_v43 = vor.u32 %v3007_v41, %v2351_v42 }
  0x7f   :  { %2488 = vmatmul.msk.bf16.gmra.mxu1 %vm447_vm0, %v2306_v46 }
  0x87   :  { %544 = vmatmul.bf16.gmra.mxu0 %v2302_v51  ;;  %v2350_v51 = vor.u32 %v3008_v50, %v2349_v49  ;;  %v3017_v50 = vld [vmem:[#allocation2 + $0x104] sm:$0xf] }
  0x8f   :  { %2489 = vmatmul.msk.bf16.gmra.mxu1 %vm447_vm0, %v2314_v55  ;;  %v2359_v55 = vld [vmem:[#allocation2 + $0xc8] sm:$0xf0] }
  0x90   :  { %v2362_v56 = vor.u32 %v3009_v54, %v2359_v55 }
  0x97   :  { %549 = vmatmul.bf16.gmra.mxu0 %v2310_v60 }
  0x9f   :  { %2490 = vmatmul.msk.bf16.gmra.mxu1 %vm447_vm0, %v2322_v1  ;;  %v2358_v1 = vor.u32 %v3010_v63, %v2357_v62  ;;  %v3019_v63 = vld [vmem:[#allocation2 + $0x114] sm:$0xf] }
  0xa7   :  { %554 = vmatmul.bf16.gmra.mxu0 %v2318_v5  ;;  %v3040_v5 = vld [vmem:[%s3689_s3 + $0x68] sm:$0xff] }
  0xa8   :  { %1002 = vmatpush.bf16.msra.mxu3 %v3040_v5 }
  0xac   :  { %v634_v9 = vpop.f32.mrf.mxu1  ;;  %1003 = vmatpush.bf16.msra.mxu3 %v3039_v11 }
  0xaf   :  { %2491 = vmatmul.msk.bf16.gmra.mxu1 %vm447_vm0, %v2330_v8  ;;  %v2370_v8 = vor.u32 %v3011_v6, %v2367_v7  ;;  %v2397_v7 = vld [vmem:[#allocation2 + $0x110] sm:$0xf] }
  0xb4   :  { %v520_v13 = vpop.f32.mrf.mxu0  ;;  %v636_v14 = vpop.f32.mrf.mxu1 }
  0xb5   :  { %v635_v20 = vadd.f32 %v634_v9, %v520_v13 }
  0xb7   :  { %559 = vmatmul.bf16.gmra.mxu0 %v2326_v12 }
  0xbc   :  { %v522_v18 = vpop.f32.mrf.mxu0  ;;  %v639_v19 = vpop.f32.mrf.mxu1 }
  0xbd   :  { %v637_v21 = vadd.f32 %v636_v14, %v522_v18  ;;  %v2366_v18 = vor.u32 %v3012_v16, %v2365_v15 }
  0xbf   :  { %2492 = vmatmul.msk.bf16.gmra.mxu1 %vm447_vm0, %v2338_v17  ;;  %v739_v22 = vpack.c.bf16 %v637_v21, %v635_v20  ;;  %v3038_v17 = vld [vmem:[%s3689_s3 + $0x58] sm:$0xff]  ;;  %v3037_v21 = vld [vmem:[%s3689_s3 + $0x50] sm:$0xff] }
  0xc0   :  { %1004 = vmatpush.bf16.msra.mxu3 %v3038_v17 }
  0xc1   :  { %964 = vmatmul.bf16.vlgmr.msra.gmra.mxu2 %v739_v22  ;;  %v3036_v22 = vld [vmem:[%s3689_s3 + $0x48] sm:$0xff] }
  0xc4   :  { %v525_v26 = vpop.f32.mrf.mxu0  ;;  %v641_v27 = vpop.f32.mrf.mxu1  ;;  %1005 = vmatpush.bf16.msra.mxu3 %v3037_v21  ;;  %v3022_v21 = vld [vmem:[#allocation2 + $0x124] sm:$0xf0] }
  0xc5   :  { %v640_v33 = vadd.f32 %v639_v19, %v525_v26 }
  0xc7   :  { %564 = vmatmul.bf16.gmra.mxu0 %v2334_v25  ;;  %v2378_v25 = vor.u32 %v3013_v23, %v2375_v24 }
  0xc8   :  { %1006 = vmatpush.bf16.msra.mxu3 %v3036_v22 }
  0xcc   :  { %v527_v31 = vpop.f32.mrf.mxu0  ;;  %v644_v32 = vpop.f32.mrf.mxu1  ;;  %1007 = vmatpush.bf16.msra.mxu3 %v3035_v28 }
  0xcd   :  { %v642_v34 = vadd.f32 %v641_v27, %v527_v31 }
  0xcf   :  { %2493 = vmatmul.msk.bf16.gmra.mxu1 %vm447_vm0, %v2346_v30  ;;  %v742_v35 = vpack.c.bf16 %v642_v34, %v640_v33  ;;  %v3014_v33 = vld [vmem:[#allocation2 + $0xe4] sm:$0xf0] }
  0xd1   :  { %969 = vmatmul.bf16.gmra.mxu2 %v742_v35 }
  0xd4   :  { %v530_v39 = vpop.f32.mrf.mxu0  ;;  %v646_v40 = vpop.f32.mrf.mxu1 }
  0xd5   :  { %v645_v46 = vadd.f32 %v644_v32, %v530_v39  ;;  %v2373_v32 = vld [vmem:[#allocation2 + $0xe0] sm:$0xf] }
  0xd6   :  { %v2374_v34 = vor.u32 %v3014_v33, %v2373_v32  ;;  %v2413_v33 = vld [vmem:[#allocation2 + $0x130] sm:$0xf] }
  0xd7   :  { %569 = vmatmul.bf16.gmra.mxu0 %v2342_v38  ;;  %v2383_v38 = vld [vmem:[#allocation2 + $0xf8] sm:$0xf0] }
  0xd8   :  { %v2386_v39 = vor.u32 %v3015_v37, %v2383_v38 }
  0xdc   :  { %v532_v44 = vpop.f32.mrf.mxu0  ;;  %v649_v45 = vpop.f32.mrf.mxu1 }
  0xdd   :  { %v647_v47 = vadd.f32 %v646_v40, %v532_v44 }
  0xdf   :  { %2494 = vmatmul.msk.bf16.gmra.mxu1 %vm447_vm0, %v2354_v43  ;;  %v745_v48 = vpack.c.bf16 %v647_v47, %v645_v46  ;;  %v3016_v46 = vld [vmem:[#allocation2 + $0xf4] sm:$0xf0] }
  0xe1   :  { %974 = vmatmul.bf16.gmra.mxu2 %v745_v48 }
  0xe4   :  { %v535_v52 = vpop.f32.mrf.mxu0  ;;  %v651_v53 = vpop.f32.mrf.mxu1 }
  0xe5   :  { %v650_v59 = vadd.f32 %v649_v45, %v535_v52  ;;  %v2381_v45 = vld [vmem:[#allocation2 + $0xf0] sm:$0xf] }
  0xe6   :  { %v2382_v47 = vor.u32 %v3016_v46, %v2381_v45 }
  0xe7   :  { %574 = vmatmul.bf16.gmra.mxu0 %v2350_v51  ;;  %v2391_v51 = vld [vmem:[#allocation2 + $0x108] sm:$0xf0] }
  0xe8   :  { %v2394_v52 = vor.u32 %v3017_v50, %v2391_v51  ;;  %v2421_v50 = vld [vmem:[#allocation2 + $0x140] sm:$0xf]  ;;  %v3026_v51 = vld [vmem:[#allocation2 + $0x144] sm:$0xf0] }
  0xec   :  { %v537_v57 = vpop.f32.mrf.mxu0  ;;  %v654_v58 = vpop.f32.mrf.mxu1 }
  0xed   :  { %v652_v60 = vadd.f32 %v651_v53, %v537_v57 }
  0xef   :  { %2495 = vmatmul.msk.bf16.gmra.mxu1 %vm447_vm0, %v2362_v56  ;;  %v748_v61 = vpack.c.bf16 %v652_v60, %v650_v59  ;;  %v3018_v59 = vld [vmem:[#allocation2 + $0x104] sm:$0xf0] }
  0xf1   :  { %979 = vmatmul.bf16.gmra.mxu2 %v748_v61 }
  0xf4   :  { %v540_v2 = vpop.f32.mrf.mxu0  ;;  %v656_v3 = vpop.f32.mrf.mxu1 }
  0xf5   :  { %v655_v12 = vadd.f32 %v654_v58, %v540_v2  ;;  %v2389_v58 = vld [vmem:[#allocation2 + $0x100] sm:$0xf] }
  0xf6   :  { %v2390_v60 = vor.u32 %v3018_v59, %v2389_v58 }
  0xf7   :  { %579 = vmatmul.bf16.gmra.mxu0 %v2358_v1  ;;  %v2402_v1 = vor.u32 %v3019_v63, %v2399_v0 }
  0xfc   :  { %v542_v9 = vpop.f32.mrf.mxu0  ;;  %v659_v10 = vpop.f32.mrf.mxu1 }
  0xfd   :  { %v657_v13 = vadd.f32 %v656_v3, %v542_v9 }
  0xff   :  { %2496 = vmatmul.msk.bf16.gmra.mxu1 %vm447_vm0, %v2370_v8  ;;  %v751_v14 = vpack.c.bf16 %v657_v13, %v655_v12  ;;  %v3020_v8 = vld [vmem:[#allocation2 + $0x114] sm:$0xf0]  ;;  %v3021_v12 = vld [vmem:[#allocation2 + $0x124] sm:$0xf]  ;;  %v2407_v13 = vld [vmem:[#allocation2 + $0x128] sm:$0xf0] }
 0x100   :  { %v2398_v9 = vor.u32 %v3020_v8, %v2397_v7 }
 0x101   :  { %984 = vmatmul.bf16.gmra.mxu2 %v751_v14  ;;  %v2410_v14 = vor.u32 %v3021_v12, %v2407_v13 }
 0x104   :  { %v545_v19 = vpop.f32.mrf.mxu0  ;;  %v661_v20 = vpop.f32.mrf.mxu1 }
 0x105   :  { %v660_v29 = vadd.f32 %v659_v10, %v545_v19 }
 0x107   :  { %584 = vmatmul.bf16.gmra.mxu0 %v2366_v18 }
 0x10c   :  { %v547_v26 = vpop.f32.mrf.mxu0  ;;  %v664_v27 = vpop.f32.mrf.mxu1 }
 0x10d   :  { %v662_v30 = vadd.f32 %v661_v20, %v547_v26  ;;  %v2405_v20 = vld [vmem:[#allocation2 + $0x120] sm:$0xf]  ;;  %v2415_v26 = vld [vmem:[#allocation2 + $0x138] sm:$0xf0] }
 0x10e   :  { %v2406_v22 = vor.u32 %v3022_v21, %v2405_v20 }
 0x10f   :  { %2497 = vmatmul.msk.bf16.gmra.mxu1 %vm447_vm0, %v2378_v25  ;;  %v754_v31 = vpack.c.bf16 %v662_v30, %v660_v29  ;;  %v3023_v25 = vld [vmem:[#allocation2 + $0x134] sm:$0xf] }
 0x111   :  { %989 = vmatmul.bf16.gmra.mxu2 %v754_v31 }
 0x114   :  { %v550_v35 = vpop.f32.mrf.mxu0  ;;  %v666_v36 = vpop.f32.mrf.mxu1 }
 0x115   :  { %v665_v42 = vadd.f32 %v664_v27, %v550_v35  ;;  %v2418_v27 = vor.u32 %v3023_v25, %v2415_v26  ;;  %v3050_v35 = vld [vmem:[%s3689_s3 + $0xb8] sm:$0xff] }
 0x116   :  { %1044 = vmatpush.bf16.msrb.mxu2 %v3050_v35 }
 0x117   :  { %589 = vmatmul.bf16.gmra.mxu0 %v2374_v34  ;;  %v3024_v34 = vld [vmem:[#allocation2 + $0x134] sm:$0xf0] }
 0x11c   :  { %v552_v40 = vpop.f32.mrf.mxu0  ;;  %v669_v41 = vpop.f32.mrf.mxu1 }
 0x11d   :  { %v667_v43 = vadd.f32 %v666_v36, %v552_v40  ;;  %v2414_v36 = vor.u32 %v3024_v34, %v2413_v33  ;;  %v3048_v40 = vld [vmem:[%s3689_s3 + $0xa8] sm:$0xff] }
 0x11f   :  { %2498 = vmatmul.msk.bf16.gmra.mxu1 %vm447_vm0, %v2386_v39  ;;  %v757_v44 = vpack.c.bf16 %v667_v43, %v665_v42  ;;  %v3049_v39 = vld [vmem:[%s3689_s3 + $0xb0] sm:$0xff]  ;;  %v2423_v42 = vld [vmem:[#allocation2 + $0x148] sm:$0xf0] }
 0x120   :  { %1045 = vmatpush.bf16.msrb.mxu2 %v3049_v39 }
 0x121   :  { %994 = vmatmul.bf16.gmra.mxu2 %v757_v44 }
 0x124   :  { %v555_v48 = vpop.f32.mrf.mxu0  ;;  %v671_v49 = vpop.f32.mrf.mxu1  ;;  %1046 = vmatpush.bf16.msrb.mxu2 %v3048_v40 }
 0x125   :  { %v670_v55 = vadd.f32 %v669_v41, %v555_v48  ;;  %v3025_v41 = vld [vmem:[#allocation2 + $0x144] sm:$0xf] }
 0x126   :  { %v2426_v43 = vor.u32 %v3025_v41, %v2423_v42  ;;  %v3047_v48 = vld [vmem:[%s3689_s3 + $0xa0] sm:$0xff] }
 0x127   :  { %594 = vmatmul.bf16.gmra.mxu0 %v2382_v47 }
 0x128   :  { %1047 = vmatpush.bf16.msrb.mxu2 %v3047_v48 }
 0x12c   :  { %v557_v53 = vpop.f32.mrf.mxu0  ;;  %v674_v54 = vpop.f32.mrf.mxu1 }
 0x12d   :  { %v672_v56 = vadd.f32 %v671_v49, %v557_v53  ;;  %v2422_v53 = vor.u32 %v3026_v51, %v2421_v50 }
 0x12f   :  { %2499 = vmatmul.msk.bf16.gmra.mxu1 %vm447_vm0, %v2394_v52  ;;  %v740_v57 = vpack.c.bf16 %v672_v56, %v670_v55  ;;  %v3046_v52 = vld [vmem:[%s3689_s3 + $0x98] sm:$0xff]  ;;  %v3045_v56 = vld [vmem:[%s3689_s3 + $0x90] sm:$0xff] }
 0x130   :  { %1048 = vmatpush.bf16.msrb.mxu2 %v3046_v52 }
 0x131   :  { %1008 = vmatmul.bf16.vlgmr.msra.gmra.mxu3 %v740_v57  ;;  %v3044_v57 = vld [vmem:[%s3689_s3 + $0x88] sm:$0xff] }
 0x134   :  { %v560_v61 = vpop.f32.mrf.mxu0  ;;  %v676_v62 = vpop.f32.mrf.mxu1  ;;  %1049 = vmatpush.bf16.msrb.mxu2 %v3045_v56 }
 0x135   :  { %v675_v4 = vadd.f32 %v674_v54, %v560_v61 }
 0x137   :  { %599 = vmatmul.bf16.gmra.mxu0 %v2390_v60 }
 0x138   :  { %1050 = vmatpush.bf16.msrb.mxu2 %v3044_v57 }
 0x13c   :  { %v562_v2 = vpop.f32.mrf.mxu0  ;;  %v679_v3 = vpop.f32.mrf.mxu1 }
 0x13d   :  { %v677_v5 = vadd.f32 %v676_v62, %v562_v2  ;;  %v3043_v62 = vld [vmem:[%s3689_s3 + $0x80] sm:$0xff] }
 0x13e   :  { %1051 = vmatpush.bf16.msrb.mxu2 %v3043_v62 }
 0x13f   :  { %2500 = vmatmul.msk.bf16.gmra.mxu1 %vm447_vm0, %v2402_v1  ;;  %v743_v6 = vpack.c.bf16 %v677_v5, %v675_v4 }
 0x141   :  { %1013 = vmatmul.bf16.gmra.mxu3 %v743_v6 }
 0x144   :  { %v565_v10 = vpop.f32.mrf.mxu0  ;;  %v681_v11 = vpop.f32.mrf.mxu1 }
 0x145   :  { %v680_v17 = vadd.f32 %v679_v3, %v565_v10 }
 0x147   :  { %604 = vmatmul.bf16.gmra.mxu0 %v2398_v9  ;;  %v965_v9 = vpop.f32.mrf.mxu2 }
 0x14c   :  { %v567_v15 = vpop.f32.mrf.mxu0  ;;  %v684_v16 = vpop.f32.mrf.mxu1 }
 0x14d   :  { %v682_v18 = vadd.f32 %v681_v11, %v567_v15 }
 0x14f   :  { %2501 = vmatmul.msk.bf16.gmra.mxu1 %vm447_vm0, %v2410_v14  ;;  %v746_v19 = vpack.c.bf16 %v682_v18, %v680_v17  ;;  %v3469_v15 = vpop.f32.mrf.mxu2 }
 0x151   :  { %1018 = vmatmul.bf16.gmra.mxu3 %v746_v19 }
 0x154   :  { %v570_v23 = vpop.f32.mrf.mxu0  ;;  %v686_v24 = vpop.f32.mrf.mxu1 }
 0x155   :  { %v685_v30 = vadd.f32 %v684_v16, %v570_v23 }
 0x157   :  { %609 = vmatmul.bf16.gmra.mxu0 %v2406_v22  ;;  %v970_v20 = vpop.f32.mrf.mxu2 }
 0x15c   :  { %v572_v28 = vpop.f32.mrf.mxu0  ;;  %v689_v29 = vpop.f32.mrf.mxu1 }
 0x15d   :  { %v687_v31 = vadd.f32 %v686_v24, %v572_v28  ;;  %v3474_v24 = vld [vmem:[%s3690_s4] ss:$0 sm:$0xff] }
 0x15e   :  { %v966_v25 = vadd.f32 %v3474_v24, %v965_v9 }
 0x15f   :  { %2502 = vmatmul.msk.bf16.gmra.mxu1 %vm447_vm0, %v2418_v27  ;;  %v749_v32 = vpack.c.bf16 %v687_v31, %v685_v30  ;;  %v3477_v30 = vpop.f32.mrf.mxu2 }
 0x161   :  { %1023 = vmatmul.bf16.gmra.mxu3 %v749_v32 }
 0x164   :  { %v575_v37 = vpop.f32.mrf.mxu0  ;;  %v691_v38 = vpop.f32.mrf.mxu1 }
 0x165   :  { %v690_v46 = vadd.f32 %v689_v29, %v575_v37 }
 0x167   :  { %614 = vmatmul.bf16.gmra.mxu0 %v2414_v36  ;;  %v975_v37 = vpop.f32.mrf.mxu2 }
 0x168   :  { %v976_v50 = vadd.f32 %v3474_v24, %v975_v37 }
 0x16c   :  { %v577_v44 = vpop.f32.mrf.mxu0  ;;  %v694_v45 = vpop.f32.mrf.mxu1 }
 0x16d   :  { %v692_v47 = vadd.f32 %v691_v38, %v577_v44  ;;  %v971_v38 = vadd.f32 %v3474_v24, %v970_v20 }
 0x16f   :  { %2503 = vmatmul.msk.bf16.gmra.mxu1 %vm447_vm0, %v2426_v43  ;;  %v752_v49 = vpack.c.bf16 %v692_v47, %v690_v46  ;;  %v3482_v43 = vpop.f32.mrf.mxu2 }
 0x171   :  { %1028 = vmatmul.bf16.gmra.mxu3 %v752_v49 }
 0x174   :  { %v580_v54 = vpop.f32.mrf.mxu0  ;;  %v696_v55 = vpop.f32.mrf.mxu1 }
 0x175   :  { %v695_v60 = vadd.f32 %v694_v45, %v580_v54 }
 0x177   :  { %619 = vmatmul.bf16.gmra.mxu0 %v2422_v53  ;;  %v980_v54 = vpop.f32.mrf.mxu2 }
 0x17c   :  { %v582_v58 = vpop.f32.mrf.mxu0  ;;  %v699_v59 = vpop.f32.mrf.mxu1 }
 0x17d   :  { %v697_v61 = vadd.f32 %v696_v55, %v582_v58 }
 0x17f   :  { %v755_v63 = vpack.c.bf16 %v697_v61, %v695_v60  ;;  %v3489_v62 = vpop.f32.mrf.mxu2 }
 0x181   :  { %1033 = vmatmul.bf16.gmra.mxu3 %v755_v63  ;;  %v981_v63 = vadd.f32 %v3474_v24, %v980_v54 }
 0x184   :  { %v585_v0 = vpop.f32.mrf.mxu0  ;;  %v701_v1 = vpop.f32.mrf.mxu1 }
 0x185   :  { %v700_v4 = vadd.f32 %v699_v59, %v585_v0 }
 0x18c   :  { %v587_v2 = vpop.f32.mrf.mxu0  ;;  %v704_v3 = vpop.f32.mrf.mxu1 }
 0x18d   :  { %v702_v5 = vadd.f32 %v701_v1, %v587_v2 }
 0x18f   :  { %v758_v6 = vpack.c.bf16 %v702_v5, %v700_v4  ;;  %v985_v4 = vpop.f32.mrf.mxu2 }
 0x191   :  { %1038 = vmatmul.bf16.gmra.mxu3 %v758_v6 }
 0x194   :  { %v590_v7 = vpop.f32.mrf.mxu0  ;;  %v706_v8 = vpop.f32.mrf.mxu1 }
 0x195   :  { %v705_v12 = vadd.f32 %v704_v3, %v590_v7 }
 0x19c   :  { %v592_v10 = vpop.f32.mrf.mxu0  ;;  %v709_v11 = vpop.f32.mrf.mxu1 }
 0x19d   :  { %v707_v13 = vadd.f32 %v706_v8, %v592_v10  ;;  %v987_v10 = vpop.f32.mrf.mxu2 }
 0x19f   :  { %v741_v14 = vpack.c.bf16 %v707_v13, %v705_v12 }
 0x1a1   :  { %1052 = vmatmul.bf16.vlgmr.msrb.gmra.mxu2 %v741_v14 }
 0x1a4   :  { %v595_v16 = vpop.f32.mrf.mxu0  ;;  %v711_v17 = vpop.f32.mrf.mxu1 }
 0x1a5   :  { %v710_v21 = vadd.f32 %v709_v11, %v595_v16 }
 0x1ac   :  { %v597_v18 = vpop.f32.mrf.mxu0  ;;  %v714_v19 = vpop.f32.mrf.mxu1 }
 0x1ad   :  { %v712_v22 = vadd.f32 %v711_v17, %v597_v18  ;;  %v990_v17 = vpop.f32.mrf.mxu2 }
 0x1af   :  { %v744_v23 = vpack.c.bf16 %v712_v22, %v710_v21 }
 0x1b1   :  { %1057 = vmatmul.bf16.gmra.mxu2 %v744_v23 }
 0x1b4   :  { %v600_v26 = vpop.f32.mrf.mxu0  ;;  %v716_v27 = vpop.f32.mrf.mxu1 }
 0x1b5   :  { %v1009_v28 = vpop.f32.mrf.mxu3  ;;  %v715_v33 = vadd.f32 %v714_v19, %v600_v26  ;;  %v992_v19 = vpop.f32.mrf.mxu2 }
 0x1b6   :  { %v1010_v29 = vadd.f32 %v1009_v28, %v966_v25 }
 0x1bc   :  { %v602_v31 = vpop.f32.mrf.mxu0  ;;  %v719_v32 = vpop.f32.mrf.mxu1 }
 0x1bd   :  { %v717_v34 = vadd.f32 %v716_v27, %v602_v31  ;;  %v3479_v35 = vpop.f32.mrf.mxu3  ;;  %v995_v20 = vpop.f32.mrf.mxu2 }
 0x1bf   :  { %v747_v36 = vpack.c.bf16 %v717_v34, %v715_v33 }
 0x1c1   :  { %1062 = vmatmul.bf16.gmra.mxu2 %v747_v36 }
 0x1c4   :  { %v605_v39 = vpop.f32.mrf.mxu0  ;;  %v721_v40 = vpop.f32.mrf.mxu1 }
 0x1c5   :  { %v1014_v41 = vpop.f32.mrf.mxu3  ;;  %v720_v46 = vadd.f32 %v719_v32, %v605_v39  ;;  %v997_v21 = vpop.f32.mrf.mxu2 }
 0x1c6   :  { %v1015_v42 = vadd.f32 %v1014_v41, %v971_v38 }
 0x1cc   :  { %v607_v44 = vpop.f32.mrf.mxu0  ;;  %v724_v45 = vpop.f32.mrf.mxu1 }
 0x1cd   :  { %v722_v47 = vadd.f32 %v721_v40, %v607_v44  ;;  %v3484_v48 = vpop.f32.mrf.mxu3 }
 0x1cf   :  { %v750_v49 = vpack.c.bf16 %v722_v47, %v720_v46 }
 0x1d1   :  { %1067 = vmatmul.bf16.gmra.mxu2 %v750_v49 }
 0x1d4   :  { %v610_v51 = vpop.f32.mrf.mxu0  ;;  %v726_v52 = vpop.f32.mrf.mxu1 }
 0x1d5   :  { %v1019_v53 = vpop.f32.mrf.mxu3  ;;  %v725_v57 = vadd.f32 %v724_v45, %v610_v51 }
 0x1d6   :  { %v1020_v55 = vadd.f32 %v1019_v53, %v976_v50  ;;  %v996_v50 = vadd.f32 %v3474_v24, %v995_v20  ;;  %v998_v53 = vadd.f32 %v3474_v24, %v997_v21 }
 0x1dc   :  { %v612_v56 = vpop.f32.mrf.mxu0  ;;  %v729_v60 = vpop.f32.mrf.mxu1 }
 0x1dd   :  { %v727_v58 = vadd.f32 %v726_v52, %v612_v56  ;;  %v3487_v59 = vpop.f32.mrf.mxu3  ;;  %v993_v52 = vadd.f32 %v3474_v24, %v992_v19 }
 0x1df   :  { %v753_v61 = vpack.c.bf16 %v727_v58, %v725_v57 }
 0x1e1   :  { %1072 = vmatmul.bf16.gmra.mxu2 %v753_v61  ;;  %v988_v61 = vadd.f32 %v3474_v24, %v987_v10  ;;  %v978_v10 = vadd.f32 %v3474_v24, %v3482_v43  ;;  %v968_v43 = vadd.f32 %v3474_v24, %v3469_v15 }
 0x1e3   :  { %v1022_v20 = vadd.f32 %v3487_v59, %v978_v10  ;;  %v1012_v59 = vadd.f32 %v3479_v35, %v968_v43  ;;  %v3052_v35 = vld [vmem:[%s3691_s5 + $0x8] sm:$0xff] }
 0x1e4   :  { %v615_v0 = vpop.f32.mrf.mxu0  ;;  %v731_v3 = vpop.f32.mrf.mxu1 }
 0x1e5   :  { %v1024_v1 = vpop.f32.mrf.mxu3  ;;  %v730_v6 = vadd.f32 %v729_v60, %v615_v0 }
 0x1e6   :  { %v1025_v2 = vadd.f32 %v1024_v1, %v981_v63 }
 0x1ec   :  { %v617_v5 = vpop.f32.mrf.mxu0  ;;  %v734_v9 = vpop.f32.mrf.mxu1 }
 0x1ed   :  { %v732_v7 = vadd.f32 %v731_v3, %v617_v5  ;;  %v1026_v33 = vpop.f32.mrf.mxu3 }
 0x1ef   :  { %v756_v8 = vpack.c.bf16 %v732_v7, %v730_v6 }
 0x1f1   :  { %1077 = vmatmul.bf16.gmra.mxu2 %v756_v8  ;;  %v983_v8 = vadd.f32 %v3474_v24, %v3489_v62  ;;  %v973_v62 = vadd.f32 %v3474_v24, %v3477_v30 }
 0x1f4   :  { %v620_v11 = vpop.f32.mrf.mxu0  ;;  %v736_v12 = vpop.f32.mrf.mxu1 }
 0x1f5   :  { %v735_v14 = vadd.f32 %v734_v9, %v620_v11  ;;  %v1029_v38 = vpop.f32.mrf.mxu3 }
 0x1fc   :  { %v622_v13 = vpop.f32.mrf.mxu0 }
 0x1fd   :  { %v737_v16 = vadd.f32 %v736_v12, %v622_v13  ;;  %v1031_v40 = vpop.f32.mrf.mxu3 }
 0x1fe   :  { %v1032_v3 = vadd.f32 %v1031_v40, %v988_v61  ;;  %v3076_v61 = vld [vmem:[#allocation4 + $0x78] sm:$0xff] }
 0x1ff   :  { %v759_v18 = vpack.c.bf16 %v737_v16, %v735_v14  ;;  %v1027_v14 = vadd.f32 %v1026_v33, %v983_v8  ;;  %v1017_v33 = vadd.f32 %v3484_v48, %v973_v62  ;;  %v3082_v62 = vld [vmem:[#allocation4 + $0xa8] sm:$0xff] }
 0x201   :  { %1082 = vmatmul.bf16.gmra.mxu2 %v759_v18 }
 0x205   :  { %v1034_v44 = vpop.f32.mrf.mxu3 }
 0x20d   :  { %v1036_v45 = vpop.f32.mrf.mxu3 }
 0x20e   :  { %v1037_v56 = vadd.f32 %v1036_v45, %v993_v52  ;;  %v3062_v52 = vld [vmem:[#allocation4 + $0x8] sm:$0xff] }
 0x215   :  { %v1039_v49 = vpop.f32.mrf.mxu3 }
 0x216   :  { %v1040_v54 = vadd.f32 %v1039_v49, %v996_v50  ;;  %v3065_v49 = vld [vmem:[#allocation4 + $0x20] sm:$0xff] }
 0x217   :  { %v3057_v50 = vld [vmem:[%s3691_s5 + $0x30] sm:$0xff] }
 0x21d   :  { %v1041_v51 = vpop.f32.mrf.mxu3 }
 0x21e   :  { %v1042_v57 = vadd.f32 %v1041_v51, %v998_v53  ;;  %v3063_v51 = vld [vmem:[#allocation4 + $0x10] sm:$0xff]  ;;  %v3061_v53 = vld [vmem:[#allocation4] sm:$0xff] }
 0x224   :  { %v1053_v22 = vpop.f32.mrf.mxu2 }
 0x225   :  { %v3492_v23 = vadd.f32 %v1053_v22, %v1010_v29 }
 0x227   :  { %v1088_v45 = vmax.f32 %v3492_v23, 0.0  ;;  %v3053_v23 = vld [vmem:[%s3691_s5 + $0x10] sm:$0xff] }
 0x22c   :  { %v3494_v25 = vpop.f32.mrf.mxu2 }
 0x22d   :  { %v1056_v30 = vadd.f32 %v3494_v25, %v1012_v59  ;;  %v3054_v25 = vld [vmem:[%s3691_s5 + $0x18] sm:$0xff] }
 0x22f   :  { %v1089_v48 = vmax.f32 %v1056_v30, 0.0 }
 0x231   :  { %v1102_v15 = vpack.c.bf16 %v1089_v48, %v1088_v45 }
 0x234   :  { %v1058_v26 = vpop.f32.mrf.mxu2 }
 0x235   :  { %v3496_v27 = vadd.f32 %v1058_v26, %v1015_v42 }
 0x23c   :  { %v1060_v28 = vpop.f32.mrf.mxu2 }
 0x244   :  { %v1063_v31 = vpop.f32.mrf.mxu2 }
 0x245   :  { %v3498_v32 = vadd.f32 %v1063_v31, %v1020_v55  ;;  %v991_v55 = vadd.f32 %v3474_v24, %v990_v17 }
 0x247   :  { %v1035_v63 = vadd.f32 %v1034_v44, %v991_v55  ;;  %v3059_v55 = vld [vmem:[%s3691_s5 + $0x40] sm:$0xff] }
 0x24c   :  { %v1065_v34 = vpop.f32.mrf.mxu2 }
 0x24d   :  { %v1066_v22 = vadd.f32 %v1065_v34, %v1022_v20  ;;  %v3083_v20 = vld [vmem:[#allocation4 + $0xb0] sm:$0xff] }
 0x254   :  { %v1068_v36 = vpop.f32.mrf.mxu2 }
 0x255   :  { %v1069_v37 = vadd.f32 %v1068_v36, %v1025_v2  ;;  %v986_v2 = vadd.f32 %v3474_v24, %v985_v4  ;;  %v3051_v24 = vld [vmem:[%s3691_s5] sm:$0xff] }
 0x257   :  { %v1030_v9 = vadd.f32 %v1029_v38, %v986_v2  ;;  %v1094_v36 = vmax.f32 %v1069_v37, 0.0  ;;  %v1061_v38 = vadd.f32 %v1060_v28, %v1017_v33  ;;  %v3068_v28 = vld [vmem:[#allocation4 + $0x38] sm:$0xff]  ;;  %v1129_v2 = vld [vmem:[%s3691_s5 + $0x50] sm:$0xf] }
 0x258   :  { %1484 = vmatpush.bf16.msra.mxu2 %v3068_v28  ;;  %v3080_v33 = vld [vmem:[#allocation4 + $0x98] sm:$0xff] }
 0x259   :  { %v1091_v34 = vmax.f32 %v1061_v38, 0.0  ;;  %v3078_v38 = vld [vmem:[#allocation4 + $0x88] sm:$0xff] }
 0x25c   :  { %v1070_v39 = vpop.f32.mrf.mxu2 }
 0x25d   :  { %v1071_v18 = vadd.f32 %v1070_v39, %v1027_v14  ;;  %v1093_v39 = vmax.f32 %v1066_v22, 0.0  ;;  %v3069_v14 = vld [vmem:[#allocation4 + $0x40] sm:$0xff] }
 0x25e   :  { %v3081_v22 = vld [vmem:[#allocation4 + $0xa0] sm:$0xff] }
 0x25f   :  { %v1095_v26 = vmax.f32 %v1071_v18, 0.0 }
 0x261   :  { %v1105_v40 = vpack.c.bf16 %v1095_v26, %v1094_v36  ;;  %v3079_v36 = vld [vmem:[#allocation4 + $0x90] sm:$0xff] }
 0x264   :  { %v1073_v41 = vpop.f32.mrf.mxu2 }
 0x265   :  { %v1074_v16 = vadd.f32 %v1073_v41, %v1030_v9  ;;  %v1092_v41 = vmax.f32 %v3498_v32, 0.0  ;;  %v3056_v32 = vld [vmem:[%s3691_s5 + $0x28] sm:$0xff] }
 0x266   :  { %v3072_v9 = vld [vmem:[#allocation4 + $0x58] sm:$0xff] }
 0x267   :  { %v1096_v21 = vmax.f32 %v1074_v16, 0.0  ;;  %v1104_v44 = vpack.c.bf16 %v1093_v39, %v1092_v41  ;;  %v3077_v39 = vld [vmem:[#allocation4 + $0x80] sm:$0xff] }
 0x26c   :  { %v1075_v29 = vpop.f32.mrf.mxu2 }
 0x26d   :  { %v1076_v11 = vadd.f32 %v1075_v29, %v1032_v3  ;;  %v1090_v29 = vmax.f32 %v3496_v27, 0.0  ;;  %v3055_v27 = vld [vmem:[%s3691_s5 + $0x20] sm:$0xff]  ;;  %v1171_v3 = vunpack.c.l.b16 %v1129_v2 }
 0x26f   :  { %v1097_v4 = vmax.f32 %v1076_v11, 0.0  ;;  %v1103_v37 = vpack.c.bf16 %v1091_v34, %v1090_v29  ;;  %v1182_v8 = vpack.c.b16 %v1171_v3, %v1171_v3  ;;  %v3071_v11 = vld [vmem:[#allocation4 + $0x50] sm:$0xff] }
 0x271   :  { %v1106_v31 = vpack.c.bf16 %v1097_v4, %v1096_v21 }
 0x274   :  { %v1078_v46 = vpop.f32.mrf.mxu2 }
 0x275   :  { %v1079_v5 = vadd.f32 %v1078_v46, %v1035_v63  ;;  %v3067_v46 = vld [vmem:[#allocation4 + $0x30] sm:$0xff] }
 0x276   :  { %1485 = vmatpush.bf16.msra.mxu2 %v3067_v46  ;;  %v3075_v63 = vld [vmem:[#allocation4 + $0x70] sm:$0xff] }
 0x277   :  { %v1098_v17 = vmax.f32 %v1079_v5, 0.0  ;;  %v3073_v5 = vld [vmem:[#allocation4 + $0x60] sm:$0xff] }
 0x27c   :  { %v1080_v47 = vpop.f32.mrf.mxu2 }
 0x27d   :  { %v1081_v0 = vadd.f32 %v1080_v47, %v1037_v56  ;;  %v3066_v47 = vld [vmem:[#allocation4 + $0x28] sm:$0xff] }
 0x27e   :  { %1486 = vmatpush.bf16.msra.mxu2 %v3066_v47 }
 0x27f   :  { %v1099_v12 = vmax.f32 %v1081_v0, 0.0 }
 0x281   :  { %v1107_v19 = vpack.c.bf16 %v1099_v12, %v1098_v17 }
 0x282   :  { %1487 = vmatpush.bf16.msra.mxu2 %v3065_v49 }
 0x284   :  { %v1083_v42 = vpop.f32.mrf.mxu2 }
 0x285   :  { %v1084_v58 = vadd.f32 %v1083_v42, %v1040_v54  ;;  %v3064_v42 = vld [vmem:[#allocation4 + $0x18] sm:$0xff]  ;;  %v3058_v54 = vld [vmem:[%s3691_s5 + $0x38] sm:$0xff] }
 0x286   :  { %1488 = vmatpush.bf16.msra.mxu2 %v3064_v42 }
 0x287   :  { %v1100_v6 = vmax.f32 %v1084_v58, 0.0 }
 0x28a   :  { %1489 = vmatpush.bf16.msra.mxu2 %v3063_v51 }
 0x28c   :  { %v1085_v60 = vpop.f32.mrf.mxu2 }
 0x28d   :  { %v1086_v1 = vadd.f32 %v1085_v60, %v1042_v57  ;;  %v3060_v60 = vld [vmem:[%s3691_s5 + $0x48] sm:$0xff] }
 0x28e   :  { %1490 = vmatpush.bf16.msra.mxu2 %v3062_v52 }
 0x28f   :  { %v1101_v7 = vmax.f32 %v1086_v1, 0.0  ;;  %v3074_v1 = vld [vmem:[#allocation4 + $0x68] sm:$0xff] }
 0x291   :  { %v1108_v13 = vpack.c.bf16 %v1101_v7, %v1100_v6 }
 0x292   :  { %1491 = vmatpush.bf16.msra.mxu2 %v3061_v53 }
 0x293   :  { %1218 = vmatpush.bf16.msrb.mxu3 %v1108_v13  ;;  %v3070_v13 = vld [vmem:[#allocation4 + $0x48] sm:$0xff] }
 0x296   :  { %1512 = vmatpush.bf16.msrb.mxu2 %v3076_v61 }
 0x297   :  { %1219 = vmatpush.bf16.msrb.mxu3 %v1107_v19  ;;  %v3084_v19 = vld [vmem:[#allocation4 + $0xb8] sm:$0xff] }
 0x29a   :  { %1513 = vmatpush.bf16.msrb.mxu2 %v3075_v63 }
 0x29b   :  { %1220 = vmatpush.bf16.msrb.mxu3 %v1106_v31 }
 0x29e   :  { %1514 = vmatpush.bf16.msrb.mxu2 %v3074_v1 }
 0x29f   :  { %1221 = vmatpush.bf16.msrb.mxu3 %v1105_v40 }
 0x2a2   :  { %1515 = vmatpush.bf16.msrb.mxu2 %v3073_v5 }
 0x2a3   :  { %1222 = vmatpush.bf16.msrb.mxu3 %v1104_v44 }
 0x2a6   :  { %1516 = vmatpush.bf16.msrb.mxu2 %v3072_v9  ;;  %v3148_v9 = vld [vmem:[%s3694_s8] ss:$0 sm:$0xff] }
 0x2a7   :  { %1223 = vmatpush.bf16.msrb.mxu3 %v1103_v37 }
 0x2aa   :  { %1517 = vmatpush.bf16.msrb.mxu2 %v3071_v11 }
 0x2ab   :  { %1224 = vmatpush.bf16.msrb.mxu3 %v1102_v15 }
 0x2ae   :  { %2640 = vmatmul.msk.bf16.vlgmr.msrb.gmra.mxu3 %vm1183_vm1, %v3051_v24  ;;  %1518 = vmatpush.bf16.msrb.mxu2 %v3070_v13 }
 0x2af   :  { %1540 = vmatpush.bf16.msra.mxu3 %v3084_v19 }
 0x2b2   :  { %1519 = vmatpush.bf16.msrb.mxu2 %v3069_v14 }
 0x2b3   :  { %1541 = vmatpush.bf16.msra.mxu3 %v3083_v20 }
 0x2b7   :  { %1542 = vmatpush.bf16.msra.mxu3 %v3082_v62 }
 0x2bb   :  { %1543 = vmatpush.bf16.msra.mxu3 %v3081_v22 }
 0x2be   :  { %2641 = vmatmul.msk.bf16.gmra.mxu3 %vm1183_vm1, %v3052_v35 }
 0x2bf   :  { %1544 = vmatpush.bf16.msra.mxu3 %v3080_v33 }
 0x2c3   :  { %1545 = vmatpush.bf16.msra.mxu3 %v3079_v36 }
 0x2c7   :  { %1546 = vmatpush.bf16.msra.mxu3 %v3078_v38 }
 0x2cb   :  { %1547 = vmatpush.bf16.msra.mxu3 %v3077_v39 }
 0x2ce   :  { %2642 = vmatmul.msk.bf16.gmra.mxu3 %vm1183_vm1, %v3053_v23 }
 0x2de   :  { %2643 = vmatmul.msk.bf16.gmra.mxu3 %vm1183_vm1, %v3054_v25 }
 0x2ee   :  { %2644 = vmatmul.msk.bf16.gmra.mxu3 %vm1183_vm1, %v3055_v27 }
 0x2fe   :  { %2645 = vmatmul.msk.bf16.gmra.mxu3 %vm1183_vm1, %v3056_v32 }
 0x30e   :  { %2646 = vmatmul.msk.bf16.gmra.mxu3 %vm1183_vm1, %v3057_v50 }
 0x31e   :  { %2647 = vmatmul.msk.bf16.gmra.mxu3 %vm1183_vm1, %v3058_v54 }
 0x32e   :  { %2648 = vmatmul.msk.bf16.gmra.mxu3 %vm1183_vm1, %v3059_v55 }
 0x331   :  { %v1226_v56 = vpop.f32.mrf.mxu3 }
 0x339   :  { %v1228_v57 = vpop.f32.mrf.mxu3 }
 0x33a   :  { %v1280_v58 = vpack.c.bf16 %v1228_v57, %v1226_v56 }
 0x33c   :  { %1492 = vmatmul.bf16.vlgmr.msra.gmra.mxu2 %v1280_v58 }
 0x33e   :  { %2649 = vmatmul.msk.bf16.gmra.mxu3 %vm1183_vm1, %v3060_v60 }
 0x341   :  { %v1231_v0 = vpop.f32.mrf.mxu3 }
 0x349   :  { %v1233_v6 = vpop.f32.mrf.mxu3 }
 0x34a   :  { %v1283_v7 = vpack.c.bf16 %v1233_v6, %v1231_v0 }
 0x34c   :  { %1497 = vmatmul.bf16.gmra.mxu2 %v1283_v7  ;;  %v3147_v7 = vld [vmem:[%s3693_s7] ss:$0 sm:$0xff] }
 0x34e   :  { %2650 = vmatmul.msk.bf16.gmra.mxu3 %vm1183_vm1, %v1182_v8 }
 0x351   :  { %v1236_v12 = vpop.f32.mrf.mxu3 }
 0x359   :  { %v1238_v16 = vpop.f32.mrf.mxu3 }
 0x35a   :  { %v1286_v17 = vpack.c.bf16 %v1238_v16, %v1236_v12 }
 0x35c   :  { %1502 = vmatmul.bf16.gmra.mxu2 %v1286_v17 }
 0x361   :  { %v1241_v10 = vpop.f32.mrf.mxu3 }
 0x362   :  { %v1289_v4 = vpack.c.bf16 %v1241_v10, %v1241_v10 }
 0x369   :  { %v1243_v18 = vpop.f32.mrf.mxu3 }
 0x36c   :  { %1507 = vmatmul.bf16.gmra.mxu2 %v1289_v4 }
 0x371   :  { %v1246_v21 = vpop.f32.mrf.mxu3 }
 0x372   :  { %v1281_v31 = vpack.c.bf16 %v1246_v21, %v1243_v18 }
 0x379   :  { %v1248_v26 = vpop.f32.mrf.mxu3 }
 0x37c   :  { %1520 = vmatmul.bf16.vlgmr.msrb.gmra.mxu2 %v1281_v31 }
 0x381   :  { %v1251_v43 = vpop.f32.mrf.mxu3 }
 0x382   :  { %v1284_v59 = vpack.c.bf16 %v1251_v43, %v1248_v26 }
 0x389   :  { %v1253_v40 = vpop.f32.mrf.mxu3 }
 0x38c   :  { %1525 = vmatmul.bf16.gmra.mxu2 %v1284_v59 }
 0x391   :  { %v1256_v41 = vpop.f32.mrf.mxu3 }
 0x392   :  { %v1287_v34 = vpack.c.bf16 %v1256_v41, %v1253_v40 }
 0x399   :  { %v1258_v30 = vpop.f32.mrf.mxu3 }
 0x39a   :  { %v1290_v48 = vpack.c.bf16 %v1258_v30, %v1258_v30 }
 0x39c   :  { %1530 = vmatmul.bf16.gmra.mxu2 %v1287_v34  ;;  %v3096_v34 = vld [vmem:[#allocation6 + $0x38] sm:$0xff] }
 0x39d   :  { %1888 = vmatpush.bf16.msrb.mxu0 %v3096_v34 }
 0x3a1   :  { %v1261_v44 = vpop.f32.mrf.mxu3 }
 0x3a9   :  { %v1263_v29 = vpop.f32.mrf.mxu3 }
 0x3aa   :  { %v1282_v37 = vpack.c.bf16 %v1263_v29, %v1261_v44  ;;  %v3095_v29 = vld [vmem:[#allocation6 + $0x30] sm:$0xff] }
 0x3ab   :  { %1889 = vmatpush.bf16.msrb.mxu0 %v3095_v29 }
 0x3ac   :  { %1535 = vmatmul.bf16.gmra.mxu2 %v1290_v48  ;;  %1548 = vmatmul.bf16.vlgmr.msra.gmra.mxu3 %v1282_v37 }
 0x3b1   :  { %v1266_v45 = vpop.f32.mrf.mxu3 }
 0x3b9   :  { %v1268_v15 = vpop.f32.mrf.mxu3 }
 0x3ba   :  { %v1285_v24 = vpack.c.bf16 %v1268_v15, %v1266_v45 }
 0x3bc   :  { %1553 = vmatmul.bf16.gmra.mxu3 %v1285_v24 }
 0x3bf   :  { %v1493_v35 = vpop.f32.mrf.mxu2 }
 0x3c1   :  { %v1271_v23 = vpop.f32.mrf.mxu3 }
 0x3c7   :  { %v1495_v25 = vpop.f32.mrf.mxu2 }
 0x3c9   :  { %v1273_v27 = vpop.f32.mrf.mxu3 }
 0x3ca   :  { %v1288_v28 = vpack.c.bf16 %v1273_v27, %v1271_v23 }
 0x3cc   :  { %1558 = vmatmul.bf16.gmra.mxu3 %v1288_v28 }
 0x3cf   :  { %v1498_v32 = vpop.f32.mrf.mxu2 }
 0x3d1   :  { %v1276_v46 = vpop.f32.mrf.mxu3 }
 0x3d2   :  { %v1291_v49 = vpack.c.bf16 %v1276_v46, %v1276_v46 }
 0x3d7   :  { %v1500_v47 = vpop.f32.mrf.mxu2 }
 0x3d9   :  { %v1278_v42 = vpop.f32.mrf.mxu3 }
 0x3dc   :  { %1563 = vmatmul.bf16.gmra.mxu3 %v1291_v49 }
 0x3df   :  { %v1503_v50 = vpop.f32.mrf.mxu2 }
 0x3e7   :  { %v1505_v51 = vpop.f32.mrf.mxu2 }
 0x3ef   :  { %v1508_v52 = vpop.f32.mrf.mxu2 }
 0x3f7   :  { %v1510_v53 = vpop.f32.mrf.mxu2 }
 0x3f8   :  { %v3093_v53 = vld [vmem:[#allocation6 + $0x20] sm:$0xff] }
 0x3ff   :  { %v1521_v54 = vpop.f32.mrf.mxu2 }
 0x400   :  { %v1522_v55 = vadd.f32 %v1521_v54, %v1493_v35  ;;  %v3087_v54 = vld [vmem:[%s3695_s9 + $0x10] sm:$0xff] }
 0x407   :  { %v1523_v56 = vpop.f32.mrf.mxu2 }
 0x408   :  { %v1524_v57 = vadd.f32 %v1523_v56, %v1495_v25  ;;  %v3088_v56 = vld [vmem:[%s3695_s9 + $0x18] sm:$0xff] }
 0x40f   :  { %v1526_v58 = vpop.f32.mrf.mxu2 }
 0x410   :  { %v1527_v60 = vadd.f32 %v1526_v58, %v1498_v32 }
 0x417   :  { %v1528_v61 = vpop.f32.mrf.mxu2 }
 0x418   :  { %v1529_v63 = vadd.f32 %v1528_v61, %v1500_v47  ;;  %v3091_v61 = vld [vmem:[#allocation6 + $0x10] sm:$0xff] }
 0x41f   :  { %v1531_v0 = vpop.f32.mrf.mxu2 }
 0x420   :  { %v1532_v1 = vadd.f32 %v1531_v0, %v1503_v50  ;;  %v3094_v50 = vld [vmem:[#allocation6 + $0x28] sm:$0xff] }
 0x421   :  { %1890 = vmatpush.bf16.msrb.mxu0 %v3094_v50  ;;  %v3090_v0 = vld [vmem:[#allocation6 + $0x8] sm:$0xff]  ;;  %v3133_v50 = vld [vmem:[%s3699_s13 + $0xa0] sm:$0xff] }
 0x425   :  { %1891 = vmatpush.bf16.msrb.mxu0 %v3093_v53  ;;  %v3132_v53 = vld [vmem:[%s3699_s13 + $0x98] sm:$0xff] }
 0x427   :  { %v1533_v2 = vpop.f32.mrf.mxu2 }
 0x428   :  { %v1534_v59 = vadd.f32 %v1533_v2, %v1505_v51  ;;  %v3085_v51 = vld [vmem:[%s3695_s9] sm:$0xff]  ;;  %v3089_v2 = vld [vmem:[#allocation6] sm:$0xff] }
 0x42f   :  { %v1536_v3 = vpop.f32.mrf.mxu2  ;;  %v1549_v5 = vpop.f32.mrf.mxu3 }
 0x430   :  { %v1550_v6 = vadd.f32 %v1549_v5, %v1522_v55  ;;  %v1537_v15 = vadd.f32 %v1536_v3, %v1508_v52  ;;  %v3086_v52 = vld [vmem:[%s3695_s9 + $0x8] sm:$0xff]  ;;  %v3102_v3 = vld [vmem:[#allocation6 + $0x68] sm:$0xff]  ;;  %v3101_v5 = vld [vmem:[#allocation6 + $0x60] sm:$0xff] }
 0x431   :  { %v3092_v55 = vld [vmem:[#allocation6 + $0x18] sm:$0xff] }
 0x432   :  { %v1572_v8 = vmul.f32 %v3147_v7, %v1550_v6  ;;  %1892 = vmatpush.bf16.msrb.mxu0 %v3092_v55  ;;  %v3100_v6 = vld [vmem:[#allocation6 + $0x58] sm:$0xff] }
 0x434   :  { %v1583_v16 = vadd.f32 %v3148_v9, %v1572_v8  ;;  %v3112_v8 = vld [vmem:[#allocation6 + $0xb8] sm:$0xff] }
 0x435   :  { %1924 = vmatpush.bf16.msrb.mxu3 %v3112_v8 }
 0x436   :  { %v1590_v10 = vmax.f32 %v1583_v16, 0.0  ;;  %1893 = vmatpush.bf16.msrb.mxu0 %v3091_v61  ;;  %v3109_v16 = vld [vmem:[#allocation6 + $0xa0] sm:$0xff]  ;;  %v3129_v61 = vld [vmem:[%s3699_s13 + $0x80] sm:$0xff] }
 0x437   :  { %v1538_v11 = vpop.f32.mrf.mxu2  ;;  %v1551_v12 = vpop.f32.mrf.mxu3 }
 0x438   :  { %v1552_v13 = vadd.f32 %v1551_v12, %v1524_v57  ;;  %v1609_v57 = vld [vmem:[%s3695_s9 + $0x20] sm:$0xf]  ;;  %v3097_v12 = vld [vmem:[#allocation6 + $0x40] sm:$0xff] }
 0x439   :  { %v1627_v58 = vunpack.c.l.b16 %v1609_v57  ;;  %v3111_v11 = vld [vmem:[#allocation6 + $0xb0] sm:$0xff] }
 0x43a   :  { %v1573_v14 = vmul.f32 %v3147_v7, %v1552_v13  ;;  %1894 = vmatpush.bf16.msrb.mxu0 %v3090_v0  ;;  %1925 = vmatpush.bf16.msrb.mxu3 %v3111_v11  ;;  %v3121_v57 = vld [vmem:[%s3699_s13 + $0x40] sm:$0xff] }
 0x43c   :  { %v1584_v17 = vadd.f32 %v3148_v9, %v1573_v14  ;;  %v3110_v14 = vld [vmem:[#allocation6 + $0xa8] sm:$0xff] }
 0x43e   :  { %v1591_v18 = vmax.f32 %v1584_v17, 0.0  ;;  %1895 = vmatpush.bf16.msrb.mxu0 %v3089_v2  ;;  %1926 = vmatpush.bf16.msrb.mxu3 %v3110_v14 }
 0x43f   :  { %v1554_v4 = vpop.f32.mrf.mxu3 }
 0x440   :  { %v1597_v19 = vpack.c.bf16 %v1591_v18, %v1590_v10  ;;  %v1555_v20 = vadd.f32 %v1554_v4, %v1527_v60  ;;  %v1632_v60 = vpack.c.b16 %v1627_v58, %v1627_v58  ;;  %v3108_v18 = vld [vmem:[#allocation6 + $0x98] sm:$0xff]  ;;  %v3107_v4 = vld [vmem:[#allocation6 + $0x90] sm:$0xff] }
 0x441   :  { %v3130_v58 = vld [vmem:[%s3699_s13 + $0x88] sm:$0xff] }
 0x442   :  { %v1574_v21 = vmul.f32 %v3147_v7, %v1555_v20  ;;  %1927 = vmatpush.bf16.msrb.mxu3 %v3109_v16  ;;  %v3106_v20 = vld [vmem:[#allocation6 + $0x88] sm:$0xff] }
 0x444   :  { %v1585_v31 = vadd.f32 %v3148_v9, %v1574_v21  ;;  %v3105_v21 = vld [vmem:[#allocation6 + $0x80] sm:$0xff] }
 0x446   :  { %v1592_v36 = vmax.f32 %v1585_v31, 0.0  ;;  %1928 = vmatpush.bf16.msrb.mxu3 %v3108_v18 }
 0x447   :  { %v1556_v62 = vpop.f32.mrf.mxu3 }
 0x448   :  { %v1557_v22 = vadd.f32 %v1556_v62, %v1529_v63  ;;  %v3104_v63 = vld [vmem:[#allocation6 + $0x78] sm:$0xff] }
 0x449   :  { %1906 = vmatpush.bf16.msra.mxu2 %v3104_v63  ;;  %v1949_v63 = vld [vmem:[%s3698_s12] sm:$0xf] }
 0x44a   :  { %v1575_v26 = vmul.f32 %v3147_v7, %v1557_v22  ;;  %1929 = vmatpush.bf16.msrb.mxu3 %v3107_v4 }
 0x44c   :  { %v1586_v33 = vadd.f32 %v3148_v9, %v1575_v26 }
 0x44e   :  { %v1593_v43 = vmax.f32 %v1586_v33, 0.0  ;;  %1930 = vmatpush.bf16.msrb.mxu3 %v3106_v20 }
 0x44f   :  { %v1559_v38 = vpop.f32.mrf.mxu3 }
 0x450   :  { %v1598_v39 = vpack.c.bf16 %v1593_v43, %v1592_v36  ;;  %v1560_v40 = vadd.f32 %v1559_v38, %v1532_v1  ;;  %v3103_v1 = vld [vmem:[#allocation6 + $0x70] sm:$0xff]  ;;  %v3120_v36 = vld [vmem:[%s3699_s13 + $0x38] sm:$0xff] }
 0x451   :  { %1907 = vmatpush.bf16.msra.mxu2 %v3103_v1  ;;  %v3128_v43 = vld [vmem:[%s3699_s13 + $0x78] sm:$0xff]  ;;  %2142 = vmatpush.bf16.msra.mxu0 %v3120_v36  ;;  %v3149_v1 = vld [vmem:[%s3697_s11] ss:$0 sm:$0xff] }
 0x452   :  { %v1576_v41 = vmul.f32 %v3147_v7, %v1560_v40  ;;  %1931 = vmatpush.bf16.msrb.mxu3 %v3105_v21  ;;  %v3136_v38 = vld [vmem:[%s3699_s13 + $0xb8] sm:$0xff]  ;;  %v3127_v40 = vld [vmem:[%s3699_s13 + $0x70] sm:$0xff] }
 0x454   :  { %v1587_v37 = vadd.f32 %v3148_v9, %v1576_v41 }
 0x455   :  { %1908 = vmatpush.bf16.msra.mxu2 %v3102_v3 }
 0x456   :  { %v1594_v24 = vmax.f32 %v1587_v37, 0.0  ;;  %2168 = vmatpush.bf16.msra.mxu3 %v3136_v38 }
 0x457   :  { %v1561_v30 = vpop.f32.mrf.mxu3 }
 0x458   :  { %v1562_v44 = vadd.f32 %v1561_v30, %v1534_v59  ;;  %v3118_v30 = vld [vmem:[%s3699_s13 + $0x28] sm:$0xff] }
 0x459   :  { %1909 = vmatpush.bf16.msra.mxu2 %v3101_v5 }
 0x45a   :  { %v1577_v48 = vmul.f32 %v3147_v7, %v1562_v44 }
 0x45c   :  { %v1588_v45 = vadd.f32 %v3148_v9, %v1577_v48 }
 0x45d   :  { %1910 = vmatpush.bf16.msra.mxu2 %v3100_v6 }
 0x45e   :  { %v1595_v35 = vmax.f32 %v1588_v45, 0.0  ;;  %v3117_v45 = vld [vmem:[%s3699_s13 + $0x20] sm:$0xff] }
 0x45f   :  { %v1564_v23 = vpop.f32.mrf.mxu3 }
 0x460   :  { %v1565_v25 = vadd.f32 %v1564_v23, %v1537_v15  ;;  %v1599_v27 = vpack.c.bf16 %v1595_v35, %v1594_v24  ;;  %v3135_v15 = vld [vmem:[%s3699_s13 + $0xb0] sm:$0xff]  ;;  %v3126_v24 = vld [vmem:[%s3699_s13 + $0x68] sm:$0xff] }
 0x461   :  { %2169 = vmatpush.bf16.msra.mxu3 %v3135_v15 }
 0x462   :  { %v1578_v28 = vmul.f32 %v3147_v7, %v1565_v25  ;;  %v3099_v7 = vld [vmem:[#allocation6 + $0x50] sm:$0xff]  ;;  %v3116_v25 = vld [vmem:[%s3699_s13 + $0x18] sm:$0xff] }
 0x463   :  { %1911 = vmatpush.bf16.msra.mxu2 %v3099_v7 }
 0x464   :  { %v1589_v32 = vadd.f32 %v3148_v9, %v1578_v28  ;;  %v3098_v9 = vld [vmem:[#allocation6 + $0x48] sm:$0xff]  ;;  %v3125_v28 = vld [vmem:[%s3699_s13 + $0x60] sm:$0xff] }
 0x466   :  { %v1596_v46 = vmax.f32 %v1589_v32, 0.0  ;;  %v3115_v32 = vld [vmem:[%s3699_s13 + $0x10] sm:$0xff] }
 0x467   :  { %v1566_v47 = vpop.f32.mrf.mxu3  ;;  %1912 = vmatpush.bf16.msra.mxu2 %v3098_v9 }
 0x468   :  { %v1600_v49 = vpack.c.bf16 %v1596_v46, %v1596_v46  ;;  %v3134_v46 = vld [vmem:[%s3699_s13 + $0xa8] sm:$0xff]  ;;  %v3124_v47 = vld [vmem:[%s3699_s13 + $0x58] sm:$0xff] }
 0x469   :  { %2170 = vmatpush.bf16.msra.mxu3 %v3134_v46 }
 0x46a   :  { %v1651_v42 = vsel %vm1649_vm2, %v1600_v49, 0  ;;  %v3114_v49 = vld [vmem:[%s3699_s13 + $0x8] sm:$0xff] }
 0x46b   :  { %1657 = vmatpush.bf16.msrb.mxu1 %v1651_v42  ;;  %1913 = vmatpush.bf16.msra.mxu2 %v3097_v12 }
 0x46d   :  { %2171 = vmatpush.bf16.msra.mxu3 %v3133_v50 }
 0x46f   :  { %1658 = vmatpush.bf16.msrb.mxu1 %v1599_v27  ;;  %2155 = vmatpush.bf16.msrb.mxu2 %v3128_v43 }
 0x471   :  { %2172 = vmatpush.bf16.msra.mxu3 %v3132_v53 }
 0x473   :  { %1659 = vmatpush.bf16.msrb.mxu1 %v1598_v39  ;;  %v3119_v39 = vld [vmem:[%s3699_s13 + $0x30] sm:$0xff]  ;;  %2156 = vmatpush.bf16.msrb.mxu2 %v3127_v40 }
 0x474   :  { %2143 = vmatpush.bf16.msra.mxu0 %v3119_v39 }
 0x477   :  { %1660 = vmatpush.bf16.msrb.mxu1 %v1597_v19  ;;  %2157 = vmatpush.bf16.msrb.mxu2 %v3126_v24 }
 0x478   :  { %2144 = vmatpush.bf16.msra.mxu0 %v3118_v30  ;;  %v3150_v30 = vld [vmem:[%s3700_s14] ss:$0 sm:$0xff] }
 0x47a   :  { %2763 = vmatmul.msk.bf16.vlgmr.msrb.gmra.mxu1 %vm1633_vm3, %v3085_v51  ;;  %v3123_v51 = vld [vmem:[%s3699_s13 + $0x50] sm:$0xff] }
 0x47b   :  { %2158 = vmatpush.bf16.msrb.mxu2 %v3125_v28 }
 0x47c   :  { %2145 = vmatpush.bf16.msra.mxu0 %v3117_v45  ;;  %v3151_v45 = vld [vmem:[%s3702_s16] ss:$0 sm:$0xff] }
 0x47f   :  { %2159 = vmatpush.bf16.msrb.mxu2 %v3124_v47 }
 0x480   :  { %2146 = vmatpush.bf16.msra.mxu0 %v3116_v25 }
 0x483   :  { %2160 = vmatpush.bf16.msrb.mxu2 %v3123_v51 }
 0x484   :  { %2147 = vmatpush.bf16.msra.mxu0 %v3115_v32 }
 0x488   :  { %2148 = vmatpush.bf16.msra.mxu0 %v3114_v49 }
 0x48a   :  { %2764 = vmatmul.msk.bf16.gmra.mxu1 %vm1633_vm3, %v3086_v52  ;;  %v3113_v52 = vld [vmem:[%s3699_s13] sm:$0xff] }
 0x48c   :  { %2149 = vmatpush.bf16.msra.mxu0 %v3113_v52 }
 0x49a   :  { %2765 = vmatmul.msk.bf16.gmra.mxu1 %vm1633_vm3, %v3087_v54  ;;  %v3122_v54 = vld [vmem:[%s3699_s13 + $0x48] sm:$0xff] }
 0x49b   :  { %2161 = vmatpush.bf16.msrb.mxu2 %v3122_v54 }
 0x49f   :  { %2162 = vmatpush.bf16.msrb.mxu2 %v3121_v57 }
 0x4aa   :  { %2766 = vmatmul.msk.bf16.gmra.mxu1 %vm1633_vm3, %v3088_v56  ;;  %v3131_v56 = vld [vmem:[%s3699_s13 + $0x90] sm:$0xff]  ;;  %s3708_s13 = sld [smem:[#allocation10_spill]] }
 0x4ab   :  { %2173 = vmatpush.bf16.msra.mxu3 %v3131_v56 }
 0x4af   :  { %2174 = vmatpush.bf16.msra.mxu3 %v3130_v58 }
 0x4b0   :  { %v1948_v21 = vld [vmem:[%s3708_s13] sm:$0xff] }
 0x4b3   :  { %2175 = vmatpush.bf16.msra.mxu3 %v3129_v61 }
 0x4ba   :  { %2767 = vmatmul.msk.bf16.gmra.mxu1 %vm1633_vm3, %v1632_v60 }
 0x4f7   :  { %v1662_v13 = vpop.f32.mrf.mxu1 }
 0x4ff   :  { %v1664_v17 = vpop.f32.mrf.mxu1 }
 0x500   :  { %v1686_v10 = vpack.c.bf16 %v1664_v17, %v1662_v13 }
 0x502   :  { %1896 = vmatmul.bf16.vlgmr.msrb.gmra.mxu0 %v1686_v10 }
 0x503   :  { %2960 = vmatpush.msk.msrb.mxu0 %vm1649_vm2, %v1949_v63 }
 0x507   :  { %v1667_v19 = vpop.f32.mrf.mxu1 }
 0x508   :  { %v1689_v22 = vpack.c.bf16 %v1667_v19, %v1667_v19 }
 0x50f   :  { %v1669_v62 = vpop.f32.mrf.mxu1 }
 0x512   :  { %1901 = vmatmul.bf16.gmra.mxu0 %v1689_v22 }
 0x517   :  { %v1672_v26 = vpop.f32.mrf.mxu1 }
 0x518   :  { %v1687_v31 = vpack.c.bf16 %v1672_v26, %v1669_v62  ;;  %v3138_v26 = vld [vmem:[%s3701_s15 + $0x8] sm:$0xff] }
 0x51a   :  { %1914 = vmatmul.bf16.vlgmr.msra.gmra.mxu2 %v1687_v31  ;;  %v3137_v31 = vld [vmem:[%s3701_s15] sm:$0xff] }
 0x51f   :  { %v1674_v33 = vpop.f32.mrf.mxu1 }
 0x520   :  { %v1690_v41 = vpack.c.bf16 %v1674_v33, %v1674_v33 }
 0x527   :  { %v1677_v59 = vpop.f32.mrf.mxu1 }
 0x52a   :  { %1919 = vmatmul.bf16.gmra.mxu2 %v1690_v41 }
 0x52f   :  { %v1679_v34 = vpop.f32.mrf.mxu1 }
 0x530   :  { %v1688_v44 = vpack.c.bf16 %v1679_v34, %v1677_v59 }
 0x532   :  { %1932 = vmatmul.bf16.vlgmr.msrb.gmra.mxu3 %v1688_v44 }
 0x537   :  { %v1682_v29 = vpop.f32.mrf.mxu1 }
 0x538   :  { %v1691_v48 = vpack.c.bf16 %v1682_v29, %v1682_v29 }
 0x53f   :  { %v1684_v37 = vpop.f32.mrf.mxu1 }
 0x542   :  { %1937 = vmatmul.bf16.gmra.mxu3 %v1691_v48 }
 0x57f   :  { %v1897_v35 = vpop.f32.mrf.mxu0 }
 0x580   :  { %v1898_v2 = vadd.f32 %v3149_v1, %v1897_v35 }
 0x587   :  { %v1899_v23 = vpop.f32.mrf.mxu0 }
 0x588   :  { %v1900_v11 = vadd.f32 %v3149_v1, %v1899_v23 }
 0x58f   :  { %v1902_v27 = vpop.f32.mrf.mxu0 }
 0x590   :  { %v1903_v10 = vadd.f32 %v3149_v1, %v1902_v27 }
 0x597   :  { %v1904_v42 = vpop.f32.mrf.mxu0 }
 0x59d   :  { %v1915_v55 = vpop.f32.mrf.mxu2 }
 0x59e   :  { %v1916_v3 = vadd.f32 %v1915_v55, %v1898_v2 }
 0x5a5   :  { %v1917_v60 = vpop.f32.mrf.mxu2 }
 0x5a6   :  { %v1918_v12 = vadd.f32 %v1917_v60, %v1900_v11 }
 0x5ad   :  { %v1920_v0 = vpop.f32.mrf.mxu2 }
 0x5ae   :  { %v1921_v18 = vadd.f32 %v1920_v0, %v1903_v10 }
 0x5b5   :  { %v1933_v5 = vpop.f32.mrf.mxu3  ;;  %v1922_v6 = vpop.f32.mrf.mxu2 }
 0x5b6   :  { %v1934_v7 = vadd.f32 %v1933_v5, %v1916_v3 }
 0x5b8   :  { %v1942_v8 = vmax.f32 %v1934_v7, 0.0 }
 0x5ba   :  { %v1945_v9 = vpack.c.bf16 %v1942_v8, %v1942_v8 }
 0x5bc   :  { %2150 = vmatmul.bf16.vlgmr.msra.gmra.mxu0 %v1945_v9 }
 0x5bd   :  { %v1935_v13 = vpop.f32.mrf.mxu3  ;;  %2245 = vmatpush.bf16.msra.mxu0 %v3138_v26 }
 0x5be   :  { %v1936_v14 = vadd.f32 %v1935_v13, %v1918_v12 }
 0x5c0   :  { %v1943_v16 = vmax.f32 %v1936_v14, 0.0 }
 0x5c1   :  { %2246 = vmatpush.bf16.msra.mxu0 %v3137_v31 }
 0x5c2   :  { %v1946_v17 = vpack.c.bf16 %v1943_v16, %v1943_v16 }
 0x5c4   :  { %2163 = vmatmul.bf16.vlgmr.msrb.gmra.mxu2 %v1946_v17 }
 0x5c5   :  { %v1938_v4 = vpop.f32.mrf.mxu3 }
 0x5c6   :  { %v1939_v19 = vadd.f32 %v1938_v4, %v1921_v18 }
 0x5c8   :  { %v1944_v20 = vmax.f32 %v1939_v19, 0.0 }
 0x5ca   :  { %v1947_v62 = vpack.c.bf16 %v1944_v20, %v1944_v20 }
 0x5cc   :  { %2176 = vmatmul.bf16.vlgmr.msra.gmra.mxu3 %v1947_v62  ;;  %2961 = vmatmul.msk.f32.vlgmr.msrb.gmra.mxu0 %vm2181_vm4, %v1948_v21 }
 0x5cd   :  { %v1940_v22 = vpop.f32.mrf.mxu3 }
 0x639   :  { %v2151_v33 = vpop.f32.mrf.mxu0 }
 0x641   :  { %v2153_v36 = vpop.f32.mrf.mxu0 }
 0x647   :  { %v2164_v43 = vpop.f32.mrf.mxu2 }
 0x648   :  { %v2165_v38 = vadd.f32 %v2164_v43, %v2151_v33 }
 0x649   :  { %v2205_v39 = vpop.f32.mrf.mxu0 }
 0x64f   :  { %v2177_v40 = vpop.f32.mrf.mxu3  ;;  %v2166_v59 = vpop.f32.mrf.mxu2 }
 0x650   :  { %v2178_v41 = vadd.f32 %v2177_v40, %v2165_v38 }
 0x652   :  { %v2206_v34 = vadd.f32 %v2205_v39, %v2178_v41 }
 0x654   :  { %v2212_v44 = vadd.f32 %v3150_v30, %v2206_v34 }
 0x656   :  { %v2213_v29 = vmax.f32 %v2212_v44, 0.0 }
 0x657   :  { %v2179_v48 = vpop.f32.mrf.mxu3 }
 0x658   :  { %v2214_v37 = vpack.c.bf16 %v2213_v29, %v2213_v29 }
 0x65a   :  { %2970 = vmatmul.msk.bf16.vlgmr.msra.gmra.mxu0 %vm2235_vm5, %v2214_v37 }
 0x6d7   :  { %v2248_v15 = vpop.f32.mrf.mxu0 }
 0x6d8   :  { %v2249_v24 = vadd.f32 %v3151_v45, %v2248_v15 }
 0x6da   :  { %2252 = vst.msk [vmem:[%s3703_s17] sm:$0xff] %vm2181_vm4, %v2249_v24 }
 0x6df   :  { %v2250_v35 = vpop.f32.mrf.mxu0 }
 0x6e0   :  { %2257 = vsyncpa [#allocation3], 1 }
 0x6e1   :  { %2258 = vsyncpa [#allocation5], 1 }

</bundles_post_ra>
